<compile_context>
chip_gen: v5e
topology: v5e:2x2
jax: 0.10.0
libtpu: 0.0.40
codegen_flags: <defaults>
</compile_context>

<pallas_src>
import functools
import math

import jax
import jax.numpy as jnp
from jax import lax
from jax.experimental import pallas as pl
from jax.experimental.pallas import tpu as pltpu


# ----------------------------- in-kernel helpers -----------------------------

def _layer_norm(x, gamma, beta, eps=1e-5):
    mu = jnp.mean(x, axis=-1, keepdims=True)
    var = jnp.mean((x - mu) ** 2, axis=-1, keepdims=True)
    return (x - mu) * lax.rsqrt(var + eps) * gamma + beta


def _dot(a, b):
    # 2-D matmul: activation cast to bf16, weights already bf16, f32 accum.
    return jnp.dot(a.astype(jnp.bfloat16), b, preferred_element_type=jnp.float32)


def _bdot(a, b):
    # (H, M, K) @ (H, K, N) -> (H, M, N), leading batch dim, f32 accum.
    return lax.dot_general(a, b, (((2,), (1,)), ((0,), (0,))),
                           preferred_element_type=jnp.float32)


def _bdot_t(a, b):
    # (H, M, K) @ (H, N, K)^T -> (H, M, N), leading batch dim, f32 accum.
    return lax.dot_general(a, b, (((2,), (2,)), ((0,), (0,))),
                           preferred_element_type=jnp.float32)


# --------------------------------- the kernel --------------------------------

def conformer_kernel(num_head, kernel_size,
                     x_ref, mask_ref, maskt_ref,
                     ln_ref, cvec_ref, wide_ref,
                     f1w1_ref, f1w2_ref,
                     wqkv_ref, quvb_ref, qkvb_ref, p_ref, wo_ref,
                     pw1w_ref, dww_ref, pw2w_ref,
                     f2w1_ref, f2w2_ref,
                     out_ref):
    bf16 = jnp.bfloat16
    x = x_ref[0]              # (T, C) f32
    mask = mask_ref[0]        # (T, 1) f32
    mask_t = maskt_ref[0]     # (1, T) f32

    T, C = x.shape
    H = num_head
    dk = C // H
    K = kernel_size
    pad = (K - 1) // 2
    hid = f1w1_ref.shape[1]
    minval = jnp.finfo(jnp.float32).min

    # cvec slab row indices (see _fold_params)
    F1B2, BO, DWB, BNS, BNB, PW2B, F2B2 = range(7)

    def cvec(i):
        return cvec_ref[i:i + 1, :]                       # (1, C)

    def ln(v, idx):
        return _layer_norm(v, ln_ref[2 * idx:2 * idx + 1, :],
                           ln_ref[2 * idx + 1:2 * idx + 2, :])

    def ffn(v, w1_ref, b1_row, w2_ref, b2_row):
        h = _dot(v, w1_ref[...]) + wide_ref[b1_row:b1_row + 1, 0:hid]
        h = h * jax.nn.sigmoid(h)                         # SiLU (f32)
        return _dot(h, w2_ref[...]) + cvec(b2_row)

    # ------------------------- FFN1 (half-step residual) ---------------------
    x = x + 0.5 * ffn(ln(x, 0), f1w1_ref, 0, f1w2_ref, F1B2) * mask

    # ----------------- relative-position multi-head self attention -----------
    y = ln(x, 1)
    # Fused QKV: one head-batched dot_general against the (H, C, 3*dk) slab.
    y_b = jnp.broadcast_to(y.astype(bf16)[None, :, :], (H, T, C))
    qkv = _bdot(y_b, wqkv_ref[...]) + qkvb_ref[...]       # (H, T, 3dk) f32
    q = qkv[:, :, 0:dk]                                   # 1/sqrt(dk) pre-folded
    kh = qkv[:, :, dk:2 * dk].astype(bf16)
    vh = qkv[:, :, 2 * dk:3 * dk].astype(bf16)
    q_u = (q + quvb_ref[:, 0:1, :]).astype(bf16)          # q + bias + pos_bias_u (scaled)
    q_v = (q + quvb_ref[:, 1:2, :]).astype(bf16)          # q + bias + pos_bias_v (scaled)

    matrix_ac = _bdot_t(q_u, kh)                          # (H, T, T)
    bd = _bdot_t(q_v, p_ref[...])                         # (H, T, 2T); col 2T-1 unused

    # rel_shift: out[h, i, j] = bd[h, i, j + (T-1-i)]  (ESPnet pos_emb ordering,
    # relative offset +(T-1) ... -(T-1)).  Implemented as a log-step barrel
    # shifter: rotate row i left by (T-1-i) using ceil(log2 T) full-tile
    # rotate+select steps; kept columns j < T never see wrapped values.
    W = 2 * T
    l_col = (T - 1) - lax.broadcasted_iota(jnp.int32, (1, T, 1), 1)   # left amount
    n_bits = (T - 1).bit_length()
    for b in range(n_bits):
        amt = 1 << b
        rotated = jnp.concatenate([bd[:, :, amt:], bd[:, :, :amt]], axis=-1)
        take = (l_col & amt) != 0                          # rows needing this step
        bd = jnp.where(take, rotated, bd)
    bd_shift = bd[:, :, 0:T]                               # (H, T, T)

    scores = matrix_ac + bd_shift                          # scale folded into q path
    not_valid = ((mask * mask_t) == 0.0)[None, :, :]       # (1, T, T) bool
    scores = jnp.where(not_valid, minval, scores)
    scores = scores - jnp.max(scores, axis=-1, keepdims=True)
    e = jnp.exp(scores)
    attn = e * pl.reciprocal(jnp.sum(e, axis=-1, keepdims=True), approx=True)
    # NOTE: the reference zeroes masked attn entries post-softmax; exp underflow
    # already makes them exactly 0 for valid query rows, and fully padded query
    # rows are zeroed by `* mask` on the residual below, so the select is dropped.

    ctx = _bdot(attn.astype(bf16), vh)                     # (H, T, dk) f32
    ctx_tc = jnp.concatenate([ctx[h] for h in range(H)], axis=-1)   # (T, C), head-major
    y_attn = _dot(ctx_tc, wo_ref[...]) + cvec(BO)          # single C-deep out proj
    x = x + y_attn * mask

    # ------------------------------ convolution module -----------------------
    # Note: like the PyTorch reference, the conv-module input is NOT re-masked
    # before the depthwise conv (padded frames may leak into edge windows).
    y = ln(x, 2)
    hg = _dot(y, pw1w_ref[...]) + wide_ref[2:3, 0:2 * C]   # pointwise_conv1 (T, 2C)
    u = hg[:, 0:C] * jax.nn.sigmoid(hg[:, C:2 * C])        # GLU over channels

    # Depthwise conv with zero padding: one padded buffer + K static sublane
    # slices, no per-tap masking.
    dww = dww_ref[...]                                     # (K, C) f32
    if pad > 0:
        zpad = jnp.zeros((pad, C), jnp.float32)
        u_ext = jnp.concatenate([zpad, u, zpad], axis=0)   # (T + 2*pad, C)
    else:
        u_ext = u
    acc = u_ext[0:T, :] * dww[0:1, :]
    for j in range(1, K):
        acc = acc + u_ext[j:j + T, :] * dww[j:j + 1, :]
    dconv = acc + cvec(DWB)

    bnout = dconv * cvec(BNS) + cvec(BNB)                  # folded eval BatchNorm
    act = jnp.maximum(bnout, 0.0)                          # ReLU
    y = _dot(act, pw2w_ref[...]) + cvec(PW2B)              # pointwise_conv2
    x = x + y * mask

    # ------------------------- FFN2 (half-step) + final norm ------------------
    x = x + 0.5 * ffn(ln(x, 3), f2w1_ref, 1, f2w2_ref, F2B2) * mask
    x = ln(x, 4)

    out_ref[...] = x[None, :, :]


# ------------------------- wrapper-side parameter folding ---------------------

def _fold_params(params, pos_emb, *, num_head, bn_eps=1e-5):
    """All batch-independent precomputation happens here, in plain XLA."""
    f32, bf16 = jnp.float32, jnp.bfloat16
    C = params["attn_wq"].shape[0]
    H = num_head
    dk = C // H
    P = pos_emb.shape[0]                                   # 2T-1
    hid = params["ffn1_b1"].shape[0]
    inv_sqrt_dk = 1.0 / math.sqrt(dk)

    def heads_in(w):      # (C, C) for x @ W  ->  (H, C, dk) per-head columns
        return jnp.transpose(w.reshape(C, H, dk), (1, 0, 2))

    # Fused QKV slabs; 1/sqrt(dk) folded into the q path.
    wq = heads_in(params["attn_wq"]) * inv_sqrt_dk
    wk = heads_in(params["attn_wk"])
    wv = heads_in(params["attn_wv"])
    wqkv = jnp.concatenate([wq, wk, wv], axis=-1)          # (H, C, 3dk)

    bq = params["attn_bq"].reshape(H, 1, dk)
    bqu = (bq + params["pos_bias_u"][:, None, :]) * inv_sqrt_dk
    bqv = (bq + params["pos_bias_v"][:, None, :]) * inv_sqrt_dk
    quvb = jnp.concatenate([bqu, bqv], axis=1)             # (H, 2, dk)
    qkvb = jnp.concatenate(
        [jnp.zeros((H, 1, dk), f32),                       # q bias folded into bqu/bqv
         params["attn_bk"].reshape(H, 1, dk),
         params["attn_bv"].reshape(H, 1, dk)], axis=-1)    # (H, 1, 3dk)

    # Positional projection hoisted (batch independent); one zero row appended
    # so matrix_bd has lane-friendly width 2T (column 2T-1 never used).
    p = pos_emb @ params["attn_wpos"]                      # (2T-1, C)
    p_heads = jnp.transpose(p.reshape(P, H, dk), (1, 0, 2))
    p_pad = jnp.concatenate([p_heads, jnp.zeros((H, 1, dk), p.dtype)], axis=1)

    # eval-mode BatchNorm folded into scale / shift.
    bn_scale = params["bn_gamma"] * lax.rsqrt(params["bn_var"] + bn_eps)
    bn_shift = params["bn_beta"] - params["bn_mean"] * bn_scale

    # Consolidated small-constant slabs.
    wide_w = max(hid, 2 * C)

    def wrow(v):
        return jnp.pad(v, (0, wide_w - v.shape[0]))[None, :]

    wide = jnp.concatenate([wrow(params["ffn1_b1"]),
                            wrow(params["ffn2_b1"]),
                            wrow(params["conv_pw1_b"])], axis=0)       # (3, wide_w)

    cvec = jnp.stack([params["ffn1_b2"], params["attn_bo"],
                      params["conv_dw_b"], bn_scale, bn_shift,
                      params["conv_pw2_b"], params["ffn2_b2"]], axis=0)  # (7, C)

    return [
        params["ln"].astype(f32), cvec.astype(f32), wide.astype(f32),
        params["ffn1_w1"].astype(bf16), params["ffn1_w2"].astype(bf16),
        wqkv.astype(bf16), quvb.astype(f32), qkvb.astype(f32),
        p_pad.astype(bf16), params["attn_wo"].astype(bf16),
        params["conv_pw1_w"].astype(bf16), params["conv_dw_w"].astype(f32),
        params["conv_pw2_w"].astype(bf16),
        params["ffn2_w1"].astype(bf16), params["ffn2_w2"].astype(bf16),
    ]


# --------------------------------- wrapper -----------------------------------

def conformer_layer_forward(x, pos_emb, mask, params, *, num_head, kernel_size):
    B, T, C = x.shape
    mask = mask.astype(jnp.float32)
    mask_t = jnp.transpose(mask, (0, 2, 1))                # (B, 1, T)
    consts = _fold_params(params, pos_emb, num_head=num_head)

    def batch_spec(shape):
        nd = len(shape)
        return pl.BlockSpec((1,) + tuple(shape[1:]),
                            lambda b, nd=nd: (b,) + (0,) * (nd - 1))

    def const_spec(shape):
        nd = len(shape)
        return pl.BlockSpec(tuple(shape), lambda b, nd=nd: (0,) * nd)

    in_specs = ([batch_spec(x.shape), batch_spec(mask.shape), batch_spec(mask_t.shape)]
                + [const_spec(c.shape) for c in consts])
    out_spec = pl.BlockSpec((1, T, C), lambda b: (b, 0, 0))

    kernel = functools.partial(conformer_kernel, num_head, kernel_size)
    return pl.pallas_call(
        kernel,
        out_shape=jax.ShapeDtypeStruct((B, T, C), jnp.float32),
        grid=(B,),
        in_specs=in_specs,
        out_specs=out_spec,
        compiler_params=pltpu.CompilerParams(
            dimension_semantics=("parallel",),
            vmem_limit_bytes=64 * 1024 * 1024),
    )(x, mask, mask_t, *consts)


# ------------------------------ parameter init --------------------------------

def init_params(key, channels, num_head, kernel_size, ffn_scale=4):
    C = channels
    H = num_head
    dk = C // H
    hid = C * ffn_scale
    keys = iter(jax.random.split(key, 48))

    def rnd(shape, scale=1.0):
        return jax.random.normal(next(keys), shape, jnp.float32) * scale

    def lin(fan_in, fan_out):
        return rnd((fan_in, fan_out), 1.0 / math.sqrt(fan_in))

    ln_rows = []
    for _ in range(5):                                     # 5 LayerNorms: gamma, beta
        ln_rows.append(1.0 + 0.1 * rnd((1, C)))
        ln_rows.append(0.1 * rnd((1, C)))

    return {
        "ln": jnp.concatenate(ln_rows, axis=0),            # (10, C)
        "ffn1_w1": lin(C, hid), "ffn1_b1": 0.1 * rnd((hid,)),
        "ffn1_w2": lin(hid, C), "ffn1_b2": 0.1 * rnd((C,)),
        "attn_wq": lin(C, C), "attn_bq": 0.1 * rnd((C,)),
        "attn_wk": lin(C, C), "attn_bk": 0.1 * rnd((C,)),
        "attn_wv": lin(C, C), "attn_bv": 0.1 * rnd((C,)),
        "attn_wo": lin(C, C), "attn_bo": 0.1 * rnd((C,)),
        "attn_wpos": lin(C, C),                            # linear_pos (no bias)
        "pos_bias_u": rnd((H, dk), 1.0 / math.sqrt(dk)),
        "pos_bias_v": rnd((H, dk), 1.0 / math.sqrt(dk)),
        "conv_pw1_w": lin(C, 2 * C), "conv_pw1_b": 0.1 * rnd((2 * C,)),
        "conv_dw_w": rnd((kernel_size, C), 1.0 / math.sqrt(kernel_size)),
        "conv_dw_b": 0.1 * rnd((C,)),
        "bn_gamma": 1.0 + 0.1 * rnd((C,)),
        "bn_beta": 0.1 * rnd((C,)),
        "bn_mean": 0.1 * rnd((C,)),
        "bn_var": 1.0 + 0.1 * jnp.abs(rnd((C,))),
        "conv_pw2_w": lin(C, C), "conv_pw2_b": 0.1 * rnd((C,)),
        "ffn2_w1": lin(C, hid), "ffn2_b1": 0.1 * rnd((hid,)),
        "ffn2_w2": lin(hid, C), "ffn2_b2": 0.1 * rnd((C,)),
    }


# ----------------------------------- main -------------------------------------

if __name__ == "__main__":
    B, T, C = 2, 8, 32
    num_head = 4
    kernel_size = 3

    key = jax.random.PRNGKey(0)
    k_x, k_pos, k_par = jax.random.split(key, 3)

    x = jax.random.normal(k_x, (B, T, C), jnp.float32)
    pos_emb = jax.random.normal(k_pos, (2 * T - 1, C), jnp.float32)   # (2T-1, C)
    lengths = jnp.array([T, T - 2], jnp.int32)
    mask = (jnp.arange(T)[None, :] < lengths[:, None]).astype(jnp.float32)[..., None]

    params = init_params(k_par, C, num_head, kernel_size)

    out = conformer_layer_forward(x, pos_emb, mask, params,
                                  num_head=num_head, kernel_size=kernel_size)
    out = jax.block_until_ready(out)
    assert out.shape == (B, T, C)
    assert bool(jnp.all(jnp.isfinite(out)))
    print("KERNEL_OK")
</pallas_src>

<mosaic_0001>
module attributes {stable_mosaic.version = 11 : i64} {
  func.func @conformer_kernel(%arg0: i32, %arg1: memref<1x8x32xf32, #tpu.memory_space<vmem>>, %arg2: memref<1x8x1xf32, #tpu.memory_space<vmem>>, %arg3: memref<1x1x8xf32, #tpu.memory_space<vmem>>, %arg4: memref<10x32xf32, #tpu.memory_space<vmem>>, %arg5: memref<7x32xf32, #tpu.memory_space<vmem>>, %arg6: memref<3x128xf32, #tpu.memory_space<vmem>>, %arg7: memref<32x128xbf16, #tpu.memory_space<vmem>>, %arg8: memref<128x32xbf16, #tpu.memory_space<vmem>>, %arg9: memref<4x32x24xbf16, #tpu.memory_space<vmem>>, %arg10: memref<4x2x8xf32, #tpu.memory_space<vmem>>, %arg11: memref<4x1x24xf32, #tpu.memory_space<vmem>>, %arg12: memref<4x16x8xbf16, #tpu.memory_space<vmem>>, %arg13: memref<32x32xbf16, #tpu.memory_space<vmem>>, %arg14: memref<32x64xbf16, #tpu.memory_space<vmem>>, %arg15: memref<3x32xf32, #tpu.memory_space<vmem>>, %arg16: memref<32x32xbf16, #tpu.memory_space<vmem>>, %arg17: memref<32x128xbf16, #tpu.memory_space<vmem>>, %arg18: memref<128x32xbf16, #tpu.memory_space<vmem>>, %arg19: memref<1x8x32xf32, #tpu.memory_space<vmem>>) attributes {dimension_semantics = [#tpu.dimension_semantics<parallel>], iteration_bounds = array<i64: 2>, scalar_prefetch = 0 : i64, scratch_operands = 0 : i64, tpu.core_type = #tpu.core_type<tc>, window_params = [{transform_indices = @transform_0, window_bounds = array<i64: 1, 8, 32>}, {transform_indices = @transform_1, window_bounds = array<i64: 1, 8, 1>}, {transform_indices = @transform_2, window_bounds = array<i64: 1, 1, 8>}, {pipeline_mode = #tpu.pipeline_mode<synchronous>, transform_indices = @transform_3, window_bounds = array<i64: 10, 32>}, {pipeline_mode = #tpu.pipeline_mode<synchronous>, transform_indices = @transform_4, window_bounds = array<i64: 7, 32>}, {pipeline_mode = #tpu.pipeline_mode<synchronous>, transform_indices = @transform_5, window_bounds = array<i64: 3, 128>}, {pipeline_mode = #tpu.pipeline_mode<synchronous>, transform_indices = @transform_6, window_bounds = array<i64: 32, 128>}, {pipeline_mode = #tpu.pipeline_mode<synchronous>, transform_indices = @transform_7, window_bounds = array<i64: 128, 32>}, {pipeline_mode = #tpu.pipeline_mode<synchronous>, transform_indices = @transform_8, window_bounds = array<i64: 4, 32, 24>}, {pipeline_mode = #tpu.pipeline_mode<synchronous>, transform_indices = @transform_9, window_bounds = array<i64: 4, 2, 8>}, {pipeline_mode = #tpu.pipeline_mode<synchronous>, transform_indices = @transform_10, window_bounds = array<i64: 4, 1, 24>}, {pipeline_mode = #tpu.pipeline_mode<synchronous>, transform_indices = @transform_11, window_bounds = array<i64: 4, 16, 8>}, {pipeline_mode = #tpu.pipeline_mode<synchronous>, transform_indices = @transform_12, window_bounds = array<i64: 32, 32>}, {pipeline_mode = #tpu.pipeline_mode<synchronous>, transform_indices = @transform_13, window_bounds = array<i64: 32, 64>}, {pipeline_mode = #tpu.pipeline_mode<synchronous>, transform_indices = @transform_14, window_bounds = array<i64: 3, 32>}, {pipeline_mode = #tpu.pipeline_mode<synchronous>, transform_indices = @transform_15, window_bounds = array<i64: 32, 32>}, {pipeline_mode = #tpu.pipeline_mode<synchronous>, transform_indices = @transform_16, window_bounds = array<i64: 32, 128>}, {pipeline_mode = #tpu.pipeline_mode<synchronous>, transform_indices = @transform_17, window_bounds = array<i64: 128, 32>}, {transform_indices = @transform_18, window_bounds = array<i64: 1, 8, 32>}]} {
    %c0 = arith.constant 0 : index
    %c0_0 = arith.constant 0 : index
    %c0_1 = arith.constant 0 : index
    %0 = vector.load %arg1[%c0, %c0_0, %c0_1] : memref<1x8x32xf32, #tpu.memory_space<vmem>>, vector<1x8x32xf32>
    %1 = vector.shape_cast %0 : vector<1x8x32xf32> to vector<8x32xf32>
    %c0_2 = arith.constant 0 : index
    %c0_3 = arith.constant 0 : index
    %c0_4 = arith.constant 0 : index
    %2 = vector.load %arg2[%c0_2, %c0_3, %c0_4] : memref<1x8x1xf32, #tpu.memory_space<vmem>>, vector<1x8x1xf32>
    %3 = vector.shape_cast %2 : vector<1x8x1xf32> to vector<8x1xf32>
    %c0_5 = arith.constant 0 : index
    %c0_6 = arith.constant 0 : index
    %c0_7 = arith.constant 0 : index
    %4 = vector.load %arg3[%c0_5, %c0_6, %c0_7] : memref<1x1x8xf32, #tpu.memory_space<vmem>>, vector<1x1x8xf32>
    %5 = vector.shape_cast %4 : vector<1x1x8xf32> to vector<1x8xf32>
    %c0_8 = arith.constant 0 : index
    %c0_9 = arith.constant 0 : index
    %6 = vector.load %arg4[%c0_8, %c0_9] : memref<10x32xf32, #tpu.memory_space<vmem>>, vector<1x32xf32>
    %c1 = arith.constant 1 : index
    %c0_10 = arith.constant 0 : index
    %7 = vector.load %arg4[%c1, %c0_10] : memref<10x32xf32, #tpu.memory_space<vmem>>, vector<1x32xf32>
    %cst = arith.constant dense<0.000000e+00> : vector<8xf32>
    %8 = vector.multi_reduction <add>, %1, %cst [1] : vector<8x32xf32> to vector<8xf32>
    %9 = vector.shape_cast %8 : vector<8xf32> to vector<8x1xf32>
    %cst_11 = arith.constant 3.200000e+01 : f32
    %10 = vector.broadcast %cst_11 : f32 to vector<8x1xf32>
    %11 = arith.divf %9, %10 : vector<8x1xf32>
    %12 = vector.broadcast %11 : vector<8x1xf32> to vector<8x32xf32>
    %13 = arith.subf %1, %12 : vector<8x32xf32>
    %14 = arith.mulf %13, %13 : vector<8x32xf32>
    %cst_12 = arith.constant dense<0.000000e+00> : vector<8xf32>
    %15 = vector.multi_reduction <add>, %14, %cst_12 [1] : vector<8x32xf32> to vector<8xf32>
    %16 = vector.shape_cast %15 : vector<8xf32> to vector<8x1xf32>
    %cst_13 = arith.constant 3.200000e+01 : f32
    %17 = vector.broadcast %cst_13 : f32 to vector<8x1xf32>
    %18 = arith.divf %16, %17 : vector<8x1xf32>
    %19 = vector.broadcast %11 : vector<8x1xf32> to vector<8x32xf32>
    %20 = arith.subf %1, %19 : vector<8x32xf32>
    %cst_14 = arith.constant 9.99999974E-6 : f32
    %21 = vector.broadcast %cst_14 : f32 to vector<8x1xf32>
    %22 = arith.addf %18, %21 : vector<8x1xf32>
    %23 = math.rsqrt %22 : vector<8x1xf32>
    %24 = vector.broadcast %23 : vector<8x1xf32> to vector<8x32xf32>
    %25 = arith.mulf %20, %24 : vector<8x32xf32>
    %26 = vector.broadcast %6 : vector<1x32xf32> to vector<8x32xf32>
    %27 = arith.mulf %25, %26 : vector<8x32xf32>
    %28 = vector.broadcast %7 : vector<1x32xf32> to vector<8x32xf32>
    %29 = arith.addf %27, %28 : vector<8x32xf32>
    %c0_15 = arith.constant 0 : index
    %c0_16 = arith.constant 0 : index
    %30 = vector.load %arg7[%c0_15, %c0_16] : memref<32x128xbf16, #tpu.memory_space<vmem>>, vector<32x128xbf16>
    %31 = arith.truncf %29 : vector<8x32xf32> to vector<8x32xbf16>
    %cst_17 = arith.constant dense<0.000000e+00> : vector<8x128xf32>
    %32 = tpu.matmul %31, %30, %cst_17 {dimension_numbers = #tpu.dot_dimension_numbers<[1], [0], [0], [1], [0, 0, 1, 1], [], []>} : vector<8x32xbf16>, vector<32x128xbf16>, vector<8x128xf32> -> vector<8x128xf32>
    %c0_18 = arith.constant 0 : index
    %c0_19 = arith.constant 0 : index
    %33 = vector.load %arg6[%c0_18, %c0_19] : memref<3x128xf32, #tpu.memory_space<vmem>>, vector<1x128xf32>
    %34 = vector.broadcast %33 : vector<1x128xf32> to vector<8x128xf32>
    %35 = arith.addf %32, %34 : vector<8x128xf32>
    %36 = arith.negf %35 : vector<8x128xf32>
    %37 = math.exp %36 : vector<8x128xf32>
    %cst_20 = arith.constant 1.000000e+00 : f32
    %38 = vector.broadcast %cst_20 : f32 to vector<8x128xf32>
    %39 = arith.addf %38, %37 : vector<8x128xf32>
    %40 = arith.divf %38, %39 : vector<8x128xf32>
    %41 = arith.mulf %35, %40 : vector<8x128xf32>
    %c0_21 = arith.constant 0 : index
    %c0_22 = arith.constant 0 : index
    %42 = vector.load %arg8[%c0_21, %c0_22] : memref<128x32xbf16, #tpu.memory_space<vmem>>, vector<128x32xbf16>
    %43 = arith.truncf %41 : vector<8x128xf32> to vector<8x128xbf16>
    %cst_23 = arith.constant dense<0.000000e+00> : vector<8x32xf32>
    %44 = tpu.matmul %43, %42, %cst_23 {dimension_numbers = #tpu.dot_dimension_numbers<[1], [0], [0], [1], [0, 0, 1, 1], [], []>} : vector<8x128xbf16>, vector<128x32xbf16>, vector<8x32xf32> -> vector<8x32xf32>
    %c0_24 = arith.constant 0 : index
    %c0_25 = arith.constant 0 : index
    %45 = vector.load %arg5[%c0_24, %c0_25] : memref<7x32xf32, #tpu.memory_space<vmem>>, vector<1x32xf32>
    %46 = vector.broadcast %45 : vector<1x32xf32> to vector<8x32xf32>
    %47 = arith.addf %44, %46 : vector<8x32xf32>
    %cst_26 = arith.constant 5.000000e-01 : f32
    %48 = vector.broadcast %cst_26 : f32 to vector<8x32xf32>
    %49 = arith.mulf %48, %47 : vector<8x32xf32>
    %50 = vector.broadcast %3 : vector<8x1xf32> to vector<8x32xf32>
    %51 = arith.mulf %49, %50 : vector<8x32xf32>
    %52 = arith.addf %1, %51 : vector<8x32xf32>
    %c2 = arith.constant 2 : index
    %c0_27 = arith.constant 0 : index
    %53 = vector.load %arg4[%c2, %c0_27] : memref<10x32xf32, #tpu.memory_space<vmem>>, vector<1x32xf32>
    %c3 = arith.constant 3 : index
    %c0_28 = arith.constant 0 : index
    %54 = vector.load %arg4[%c3, %c0_28] : memref<10x32xf32, #tpu.memory_space<vmem>>, vector<1x32xf32>
    %cst_29 = arith.constant dense<0.000000e+00> : vector<8xf32>
    %55 = vector.multi_reduction <add>, %52, %cst_29 [1] : vector<8x32xf32> to vector<8xf32>
    %56 = vector.shape_cast %55 : vector<8xf32> to vector<8x1xf32>
    %cst_30 = arith.constant 3.200000e+01 : f32
    %57 = vector.broadcast %cst_30 : f32 to vector<8x1xf32>
    %58 = arith.divf %56, %57 : vector<8x1xf32>
    %59 = vector.broadcast %58 : vector<8x1xf32> to vector<8x32xf32>
    %60 = arith.subf %52, %59 : vector<8x32xf32>
    %61 = arith.mulf %60, %60 : vector<8x32xf32>
    %cst_31 = arith.constant dense<0.000000e+00> : vector<8xf32>
    %62 = vector.multi_reduction <add>, %61, %cst_31 [1] : vector<8x32xf32> to vector<8xf32>
    %63 = vector.shape_cast %62 : vector<8xf32> to vector<8x1xf32>
    %cst_32 = arith.constant 3.200000e+01 : f32
    %64 = vector.broadcast %cst_32 : f32 to vector<8x1xf32>
    %65 = arith.divf %63, %64 : vector<8x1xf32>
    %66 = vector.broadcast %58 : vector<8x1xf32> to vector<8x32xf32>
    %67 = arith.subf %52, %66 : vector<8x32xf32>
    %cst_33 = arith.constant 9.99999974E-6 : f32
    %68 = vector.broadcast %cst_33 : f32 to vector<8x1xf32>
    %69 = arith.addf %65, %68 : vector<8x1xf32>
    %70 = math.rsqrt %69 : vector<8x1xf32>
    %71 = vector.broadcast %70 : vector<8x1xf32> to vector<8x32xf32>
    %72 = arith.mulf %67, %71 : vector<8x32xf32>
    %73 = vector.broadcast %53 : vector<1x32xf32> to vector<8x32xf32>
    %74 = arith.mulf %72, %73 : vector<8x32xf32>
    %75 = vector.broadcast %54 : vector<1x32xf32> to vector<8x32xf32>
    %76 = arith.addf %74, %75 : vector<8x32xf32>
    %77 = arith.truncf %76 : vector<8x32xf32> to vector<8x32xbf16>
    %78 = vector.shape_cast %77 : vector<8x32xbf16> to vector<1x8x32xbf16>
    %79 = vector.shape_cast %78 : vector<1x8x32xbf16> to vector<1x8x32xbf16>
    %80 = vector.broadcast %79 : vector<1x8x32xbf16> to vector<4x8x32xbf16>
    %c0_34 = arith.constant 0 : index
    %c0_35 = arith.constant 0 : index
    %c0_36 = arith.constant 0 : index
    %81 = vector.load %arg9[%c0_34, %c0_35, %c0_36] : memref<4x32x24xbf16, #tpu.memory_space<vmem>>, vector<4x32x24xbf16>
    %cst_37 = arith.constant dense<0.000000e+00> : vector<4x8x24xf32>
    %82 = tpu.matmul %80, %81, %cst_37 {dimension_numbers = #tpu.dot_dimension_numbers<[2], [1], [1], [2], [0, 0, 0, 1, 1, 2], [0], [0]>} : vector<4x8x32xbf16>, vector<4x32x24xbf16>, vector<4x8x24xf32> -> vector<4x8x24xf32>
    %c0_38 = arith.constant 0 : index
    %c0_39 = arith.constant 0 : index
    %c0_40 = arith.constant 0 : index
    %83 = vector.load %arg11[%c0_38, %c0_39, %c0_40] : memref<4x1x24xf32, #tpu.memory_space<vmem>>, vector<4x1x24xf32>
    %84 = vector.broadcast %83 : vector<4x1x24xf32> to vector<4x8x24xf32>
    %85 = arith.addf %82, %84 : vector<4x8x24xf32>
    %86 = vector.extract_strided_slice %85 {offsets = [0, 0, 0], sizes = [4, 8, 8], strides = [1, 1, 1]} : vector<4x8x24xf32> to vector<4x8x8xf32>
    %87 = vector.extract_strided_slice %85 {offsets = [0, 0, 8], sizes = [4, 8, 8], strides = [1, 1, 1]} : vector<4x8x24xf32> to vector<4x8x8xf32>
    %88 = arith.truncf %87 : vector<4x8x8xf32> to vector<4x8x8xbf16>
    %89 = vector.extract_strided_slice %85 {offsets = [0, 0, 16], sizes = [4, 8, 8], strides = [1, 1, 1]} : vector<4x8x24xf32> to vector<4x8x8xf32>
    %90 = arith.truncf %89 : vector<4x8x8xf32> to vector<4x8x8xbf16>
    %c0_41 = arith.constant 0 : index
    %c0_42 = arith.constant 0 : index
    %c0_43 = arith.constant 0 : index
    %91 = vector.load %arg10[%c0_41, %c0_42, %c0_43] : memref<4x2x8xf32, #tpu.memory_space<vmem>>, vector<4x1x8xf32>
    %92 = vector.broadcast %91 : vector<4x1x8xf32> to vector<4x8x8xf32>
    %93 = arith.addf %86, %92 : vector<4x8x8xf32>
    %94 = arith.truncf %93 : vector<4x8x8xf32> to vector<4x8x8xbf16>
    %c0_44 = arith.constant 0 : index
    %c1_45 = arith.constant 1 : index
    %c0_46 = arith.constant 0 : index
    %95 = vector.load %arg10[%c0_44, %c1_45, %c0_46] : memref<4x2x8xf32, #tpu.memory_space<vmem>>, vector<4x1x8xf32>
    %96 = vector.broadcast %95 : vector<4x1x8xf32> to vector<4x8x8xf32>
    %97 = arith.addf %86, %96 : vector<4x8x8xf32>
    %98 = arith.truncf %97 : vector<4x8x8xf32> to vector<4x8x8xbf16>
    %cst_47 = arith.constant dense<0.000000e+00> : vector<4x8x8xf32>
    %99 = tpu.matmul %94, %88, %cst_47 {dimension_numbers = #tpu.dot_dimension_numbers<[2], [2], [1], [1], [0, 0, 0, 1, 1, 1], [0], [0]>} : vector<4x8x8xbf16>, vector<4x8x8xbf16>, vector<4x8x8xf32> -> vector<4x8x8xf32>
    %c0_48 = arith.constant 0 : index
    %c0_49 = arith.constant 0 : index
    %c0_50 = arith.constant 0 : index
    %100 = vector.load %arg12[%c0_48, %c0_49, %c0_50] : memref<4x16x8xbf16, #tpu.memory_space<vmem>>, vector<4x16x8xbf16>
    %cst_51 = arith.constant dense<0.000000e+00> : vector<4x8x16xf32>
    %101 = tpu.matmul %98, %100, %cst_51 {dimension_numbers = #tpu.dot_dimension_numbers<[2], [2], [1], [1], [0, 0, 0, 1, 1, 1], [0], [0]>} : vector<4x8x8xbf16>, vector<4x16x8xbf16>, vector<4x8x16xf32> -> vector<4x8x16xf32>
    %102 = tpu.iota {dimensions = array<i32: 1>} : vector<1x8x1xi32>
    %c7_i32 = arith.constant 7 : i32
    %103 = vector.broadcast %c7_i32 : i32 to vector<1x8x1xi32>
    %104 = arith.subi %103, %102 : vector<1x8x1xi32>
    %105 = vector.extract_strided_slice %101 {offsets = [0, 0, 1], sizes = [4, 8, 15], strides = [1, 1, 1]} : vector<4x8x16xf32> to vector<4x8x15xf32>
    %106 = vector.extract_strided_slice %101 {offsets = [0, 0, 0], sizes = [4, 8, 1], strides = [1, 1, 1]} : vector<4x8x16xf32> to vector<4x8x1xf32>
    %107 = tpu.concatenate %105, %106 in 2 : vector<4x8x15xf32>, vector<4x8x1xf32> -> vector<4x8x16xf32>
    %c1_i32 = arith.constant 1 : i32
    %108 = vector.broadcast %c1_i32 : i32 to vector<1x8x1xi32>
    %109 = arith.andi %104, %108 : vector<1x8x1xi32>
    %c0_i32 = arith.constant 0 : i32
    %110 = vector.broadcast %c0_i32 : i32 to vector<1x8x1xi32>
    %111 = arith.cmpi ne, %109, %110 : vector<1x8x1xi32>
    %112 = vector.shape_cast %111 : vector<1x8x1xi1> to vector<1x8x1xi1>
    %113 = vector.broadcast %112 : vector<1x8x1xi1> to vector<4x8x16xi1>
    %114 = arith.select %113, %107, %101 : vector<4x8x16xi1>, vector<4x8x16xf32>
    %115 = vector.extract_strided_slice %114 {offsets = [0, 0, 2], sizes = [4, 8, 14], strides = [1, 1, 1]} : vector<4x8x16xf32> to vector<4x8x14xf32>
    %116 = vector.extract_strided_slice %114 {offsets = [0, 0, 0], sizes = [4, 8, 2], strides = [1, 1, 1]} : vector<4x8x16xf32> to vector<4x8x2xf32>
    %117 = tpu.concatenate %115, %116 in 2 : vector<4x8x14xf32>, vector<4x8x2xf32> -> vector<4x8x16xf32>
    %c2_i32 = arith.constant 2 : i32
    %118 = vector.broadcast %c2_i32 : i32 to vector<1x8x1xi32>
    %119 = arith.andi %104, %118 : vector<1x8x1xi32>
    %c0_i32_52 = arith.constant 0 : i32
    %120 = vector.broadcast %c0_i32_52 : i32 to vector<1x8x1xi32>
    %121 = arith.cmpi ne, %119, %120 : vector<1x8x1xi32>
    %122 = vector.shape_cast %121 : vector<1x8x1xi1> to vector<1x8x1xi1>
    %123 = vector.broadcast %122 : vector<1x8x1xi1> to vector<4x8x16xi1>
    %124 = arith.select %123, %117, %114 : vector<4x8x16xi1>, vector<4x8x16xf32>
    %125 = vector.extract_strided_slice %124 {offsets = [0, 0, 4], sizes = [4, 8, 12], strides = [1, 1, 1]} : vector<4x8x16xf32> to vector<4x8x12xf32>
    %126 = vector.extract_strided_slice %124 {offsets = [0, 0, 0], sizes = [4, 8, 4], strides = [1, 1, 1]} : vector<4x8x16xf32> to vector<4x8x4xf32>
    %127 = tpu.concatenate %125, %126 in 2 : vector<4x8x12xf32>, vector<4x8x4xf32> -> vector<4x8x16xf32>
    %c4_i32 = arith.constant 4 : i32
    %128 = vector.broadcast %c4_i32 : i32 to vector<1x8x1xi32>
    %129 = arith.andi %104, %128 : vector<1x8x1xi32>
    %c0_i32_53 = arith.constant 0 : i32
    %130 = vector.broadcast %c0_i32_53 : i32 to vector<1x8x1xi32>
    %131 = arith.cmpi ne, %129, %130 : vector<1x8x1xi32>
    %132 = vector.shape_cast %131 : vector<1x8x1xi1> to vector<1x8x1xi1>
    %133 = vector.broadcast %132 : vector<1x8x1xi1> to vector<4x8x16xi1>
    %134 = arith.select %133, %127, %124 : vector<4x8x16xi1>, vector<4x8x16xf32>
    %135 = vector.extract_strided_slice %134 {offsets = [0, 0, 0], sizes = [4, 8, 8], strides = [1, 1, 1]} : vector<4x8x16xf32> to vector<4x8x8xf32>
    %136 = arith.addf %99, %135 : vector<4x8x8xf32>
    %137 = vector.broadcast %3 : vector<8x1xf32> to vector<8x8xf32>
    %138 = vector.broadcast %5 : vector<1x8xf32> to vector<8x8xf32>
    %139 = arith.mulf %137, %138 : vector<8x8xf32>
    %cst_54 = arith.constant 0.000000e+00 : f32
    %140 = vector.broadcast %cst_54 : f32 to vector<8x8xf32>
    %141 = arith.cmpf oeq, %139, %140 : vector<8x8xf32>
    %142 = vector.shape_cast %141 : vector<8x8xi1> to vector<1x8x8xi1>
    %cst_55 = arith.constant -3.40282347E+38 : f32
    %143 = vector.shape_cast %142 : vector<1x8x8xi1> to vector<1x8x8xi1>
    %144 = vector.broadcast %143 : vector<1x8x8xi1> to vector<4x8x8xi1>
    %145 = vector.broadcast %cst_55 : f32 to vector<4x8x8xf32>
    %146 = arith.select %144, %145, %136 : vector<4x8x8xi1>, vector<4x8x8xf32>
    %cst_56 = arith.constant dense<0xFF800000> : vector<4x8xf32>
    %147 = vector.multi_reduction <maximumf>, %146, %cst_56 [2] : vector<4x8x8xf32> to vector<4x8xf32>
    %148 = vector.shape_cast %147 : vector<4x8xf32> to vector<4x8x1xf32>
    %149 = vector.broadcast %148 : vector<4x8x1xf32> to vector<4x8x8xf32>
    %150 = arith.subf %146, %149 : vector<4x8x8xf32>
    %151 = math.exp %150 : vector<4x8x8xf32>
    %cst_57 = arith.constant dense<0.000000e+00> : vector<4x8xf32>
    %152 = vector.multi_reduction <add>, %151, %cst_57 [2] : vector<4x8x8xf32> to vector<4x8xf32>
    %153 = vector.shape_cast %152 : vector<4x8xf32> to vector<4x8x1xf32>
    %154 = tpu.reciprocal %153 {approx = true} : vector<4x8x1xf32> -> vector<4x8x1xf32>
    %155 = vector.broadcast %154 : vector<4x8x1xf32> to vector<4x8x8xf32>
    %156 = arith.mulf %151, %155 : vector<4x8x8xf32>
    %157 = arith.truncf %156 : vector<4x8x8xf32> to vector<4x8x8xbf16>
    %cst_58 = arith.constant dense<0.000000e+00> : vector<4x8x8xf32>
    %158 = tpu.matmul %157, %90, %cst_58 {dimension_numbers = #tpu.dot_dimension_numbers<[2], [1], [1], [2], [0, 0, 0, 1, 1, 2], [0], [0]>} : vector<4x8x8xbf16>, vector<4x8x8xbf16>, vector<4x8x8xf32> -> vector<4x8x8xf32>
    %159 = vector.extract_strided_slice %158 {offsets = [0, 0, 0], sizes = [1, 8, 8], strides = [1, 1, 1]} : vector<4x8x8xf32> to vector<1x8x8xf32>
    %160 = vector.shape_cast %159 : vector<1x8x8xf32> to vector<8x8xf32>
    %161 = vector.extract_strided_slice %158 {offsets = [1, 0, 0], sizes = [1, 8, 8], strides = [1, 1, 1]} : vector<4x8x8xf32> to vector<1x8x8xf32>
    %162 = vector.shape_cast %161 : vector<1x8x8xf32> to vector<8x8xf32>
    %163 = vector.extract_strided_slice %158 {offsets = [2, 0, 0], sizes = [1, 8, 8], strides = [1, 1, 1]} : vector<4x8x8xf32> to vector<1x8x8xf32>
    %164 = vector.shape_cast %163 : vector<1x8x8xf32> to vector<8x8xf32>
    %165 = vector.extract_strided_slice %158 {offsets = [3, 0, 0], sizes = [1, 8, 8], strides = [1, 1, 1]} : vector<4x8x8xf32> to vector<1x8x8xf32>
    %166 = vector.shape_cast %165 : vector<1x8x8xf32> to vector<8x8xf32>
    %167 = tpu.concatenate %160, %162, %164, %166 in 1 : vector<8x8xf32>, vector<8x8xf32>, vector<8x8xf32>, vector<8x8xf32> -> vector<8x32xf32>
    %c0_59 = arith.constant 0 : index
    %c0_60 = arith.constant 0 : index
    %168 = vector.load %arg13[%c0_59, %c0_60] : memref<32x32xbf16, #tpu.memory_space<vmem>>, vector<32x32xbf16>
    %169 = arith.truncf %167 : vector<8x32xf32> to vector<8x32xbf16>
    %cst_61 = arith.constant dense<0.000000e+00> : vector<8x32xf32>
    %170 = tpu.matmul %169, %168, %cst_61 {dimension_numbers = #tpu.dot_dimension_numbers<[1], [0], [0], [1], [0, 0, 1, 1], [], []>} : vector<8x32xbf16>, vector<32x32xbf16>, vector<8x32xf32> -> vector<8x32xf32>
    %c1_62 = arith.constant 1 : index
    %c0_63 = arith.constant 0 : index
    %171 = vector.load %arg5[%c1_62, %c0_63] : memref<7x32xf32, #tpu.memory_space<vmem>>, vector<1x32xf32>
    %172 = vector.broadcast %171 : vector<1x32xf32> to vector<8x32xf32>
    %173 = arith.addf %170, %172 : vector<8x32xf32>
    %174 = vector.broadcast %3 : vector<8x1xf32> to vector<8x32xf32>
    %175 = arith.mulf %173, %174 : vector<8x32xf32>
    %176 = arith.addf %52, %175 : vector<8x32xf32>
    %c4 = arith.constant 4 : index
    %c0_64 = arith.constant 0 : index
    %177 = vector.load %arg4[%c4, %c0_64] : memref<10x32xf32, #tpu.memory_space<vmem>>, vector<1x32xf32>
    %c5 = arith.constant 5 : index
    %c0_65 = arith.constant 0 : index
    %178 = vector.load %arg4[%c5, %c0_65] : memref<10x32xf32, #tpu.memory_space<vmem>>, vector<1x32xf32>
    %cst_66 = arith.constant dense<0.000000e+00> : vector<8xf32>
    %179 = vector.multi_reduction <add>, %176, %cst_66 [1] : vector<8x32xf32> to vector<8xf32>
    %180 = vector.shape_cast %179 : vector<8xf32> to vector<8x1xf32>
    %cst_67 = arith.constant 3.200000e+01 : f32
    %181 = vector.broadcast %cst_67 : f32 to vector<8x1xf32>
    %182 = arith.divf %180, %181 : vector<8x1xf32>
    %183 = vector.broadcast %182 : vector<8x1xf32> to vector<8x32xf32>
    %184 = arith.subf %176, %183 : vector<8x32xf32>
    %185 = arith.mulf %184, %184 : vector<8x32xf32>
    %cst_68 = arith.constant dense<0.000000e+00> : vector<8xf32>
    %186 = vector.multi_reduction <add>, %185, %cst_68 [1] : vector<8x32xf32> to vector<8xf32>
    %187 = vector.shape_cast %186 : vector<8xf32> to vector<8x1xf32>
    %cst_69 = arith.constant 3.200000e+01 : f32
    %188 = vector.broadcast %cst_69 : f32 to vector<8x1xf32>
    %189 = arith.divf %187, %188 : vector<8x1xf32>
    %190 = vector.broadcast %182 : vector<8x1xf32> to vector<8x32xf32>
    %191 = arith.subf %176, %190 : vector<8x32xf32>
    %cst_70 = arith.constant 9.99999974E-6 : f32
    %192 = vector.broadcast %cst_70 : f32 to vector<8x1xf32>
    %193 = arith.addf %189, %192 : vector<8x1xf32>
    %194 = math.rsqrt %193 : vector<8x1xf32>
    %195 = vector.broadcast %194 : vector<8x1xf32> to vector<8x32xf32>
    %196 = arith.mulf %191, %195 : vector<8x32xf32>
    %197 = vector.broadcast %177 : vector<1x32xf32> to vector<8x32xf32>
    %198 = arith.mulf %196, %197 : vector<8x32xf32>
    %199 = vector.broadcast %178 : vector<1x32xf32> to vector<8x32xf32>
    %200 = arith.addf %198, %199 : vector<8x32xf32>
    %c0_71 = arith.constant 0 : index
    %c0_72 = arith.constant 0 : index
    %201 = vector.load %arg14[%c0_71, %c0_72] : memref<32x64xbf16, #tpu.memory_space<vmem>>, vector<32x64xbf16>
    %202 = arith.truncf %200 : vector<8x32xf32> to vector<8x32xbf16>
    %cst_73 = arith.constant dense<0.000000e+00> : vector<8x64xf32>
    %203 = tpu.matmul %202, %201, %cst_73 {dimension_numbers = #tpu.dot_dimension_numbers<[1], [0], [0], [1], [0, 0, 1, 1], [], []>} : vector<8x32xbf16>, vector<32x64xbf16>, vector<8x64xf32> -> vector<8x64xf32>
    %c2_74 = arith.constant 2 : index
    %c0_75 = arith.constant 0 : index
    %204 = vector.load %arg6[%c2_74, %c0_75] : memref<3x128xf32, #tpu.memory_space<vmem>>, vector<1x64xf32>
    %205 = vector.broadcast %204 : vector<1x64xf32> to vector<8x64xf32>
    %206 = arith.addf %203, %205 : vector<8x64xf32>
    %207 = vector.extract_strided_slice %206 {offsets = [0, 0], sizes = [8, 32], strides = [1, 1]} : vector<8x64xf32> to vector<8x32xf32>
    %208 = vector.extract_strided_slice %206 {offsets = [0, 32], sizes = [8, 32], strides = [1, 1]} : vector<8x64xf32> to vector<8x32xf32>
    %209 = arith.negf %208 : vector<8x32xf32>
    %210 = math.exp %209 : vector<8x32xf32>
    %cst_76 = arith.constant 1.000000e+00 : f32
    %211 = vector.broadcast %cst_76 : f32 to vector<8x32xf32>
    %212 = arith.addf %211, %210 : vector<8x32xf32>
    %213 = arith.divf %211, %212 : vector<8x32xf32>
    %214 = arith.mulf %207, %213 : vector<8x32xf32>
    %c0_77 = arith.constant 0 : index
    %c0_78 = arith.constant 0 : index
    %215 = vector.load %arg15[%c0_77, %c0_78] : memref<3x32xf32, #tpu.memory_space<vmem>>, vector<3x32xf32>
    %cst_79 = arith.constant 0.000000e+00 : f32
    %216 = vector.broadcast %cst_79 : f32 to vector<1x32xf32>
    %217 = tpu.concatenate %216, %214, %216 in 0 : vector<1x32xf32>, vector<8x32xf32>, vector<1x32xf32> -> vector<10x32xf32>
    %218 = vector.extract_strided_slice %217 {offsets = [0, 0], sizes = [8, 32], strides = [1, 1]} : vector<10x32xf32> to vector<8x32xf32>
    %219 = vector.extract_strided_slice %215 {offsets = [0, 0], sizes = [1, 32], strides = [1, 1]} : vector<3x32xf32> to vector<1x32xf32>
    %220 = vector.broadcast %219 : vector<1x32xf32> to vector<8x32xf32>
    %221 = arith.mulf %218, %220 : vector<8x32xf32>
    %222 = vector.extract_strided_slice %217 {offsets = [1, 0], sizes = [8, 32], strides = [1, 1]} : vector<10x32xf32> to vector<8x32xf32>
    %223 = vector.extract_strided_slice %215 {offsets = [1, 0], sizes = [1, 32], strides = [1, 1]} : vector<3x32xf32> to vector<1x32xf32>
    %224 = vector.broadcast %223 : vector<1x32xf32> to vector<8x32xf32>
    %225 = arith.mulf %222, %224 : vector<8x32xf32>
    %226 = arith.addf %221, %225 : vector<8x32xf32>
    %227 = vector.extract_strided_slice %217 {offsets = [2, 0], sizes = [8, 32], strides = [1, 1]} : vector<10x32xf32> to vector<8x32xf32>
    %228 = vector.extract_strided_slice %215 {offsets = [2, 0], sizes = [1, 32], strides = [1, 1]} : vector<3x32xf32> to vector<1x32xf32>
    %229 = vector.broadcast %228 : vector<1x32xf32> to vector<8x32xf32>
    %230 = arith.mulf %227, %229 : vector<8x32xf32>
    %231 = arith.addf %226, %230 : vector<8x32xf32>
    %c2_80 = arith.constant 2 : index
    %c0_81 = arith.constant 0 : index
    %232 = vector.load %arg5[%c2_80, %c0_81] : memref<7x32xf32, #tpu.memory_space<vmem>>, vector<1x32xf32>
    %233 = vector.broadcast %232 : vector<1x32xf32> to vector<8x32xf32>
    %234 = arith.addf %231, %233 : vector<8x32xf32>
    %c3_82 = arith.constant 3 : index
    %c0_83 = arith.constant 0 : index
    %235 = vector.load %arg5[%c3_82, %c0_83] : memref<7x32xf32, #tpu.memory_space<vmem>>, vector<1x32xf32>
    %236 = vector.broadcast %235 : vector<1x32xf32> to vector<8x32xf32>
    %237 = arith.mulf %234, %236 : vector<8x32xf32>
    %c4_84 = arith.constant 4 : index
    %c0_85 = arith.constant 0 : index
    %238 = vector.load %arg5[%c4_84, %c0_85] : memref<7x32xf32, #tpu.memory_space<vmem>>, vector<1x32xf32>
    %239 = vector.broadcast %238 : vector<1x32xf32> to vector<8x32xf32>
    %240 = arith.addf %237, %239 : vector<8x32xf32>
    %cst_86 = arith.constant 0.000000e+00 : f32
    %241 = vector.broadcast %cst_86 : f32 to vector<8x32xf32>
    %242 = arith.maximumf %240, %241 : vector<8x32xf32>
    %c0_87 = arith.constant 0 : index
    %c0_88 = arith.constant 0 : index
    %243 = vector.load %arg16[%c0_87, %c0_88] : memref<32x32xbf16, #tpu.memory_space<vmem>>, vector<32x32xbf16>
    %244 = arith.truncf %242 : vector<8x32xf32> to vector<8x32xbf16>
    %cst_89 = arith.constant dense<0.000000e+00> : vector<8x32xf32>
    %245 = tpu.matmul %244, %243, %cst_89 {dimension_numbers = #tpu.dot_dimension_numbers<[1], [0], [0], [1], [0, 0, 1, 1], [], []>} : vector<8x32xbf16>, vector<32x32xbf16>, vector<8x32xf32> -> vector<8x32xf32>
    %c5_90 = arith.constant 5 : index
    %c0_91 = arith.constant 0 : index
    %246 = vector.load %arg5[%c5_90, %c0_91] : memref<7x32xf32, #tpu.memory_space<vmem>>, vector<1x32xf32>
    %247 = vector.broadcast %246 : vector<1x32xf32> to vector<8x32xf32>
    %248 = arith.addf %245, %247 : vector<8x32xf32>
    %249 = vector.broadcast %3 : vector<8x1xf32> to vector<8x32xf32>
    %250 = arith.mulf %248, %249 : vector<8x32xf32>
    %251 = arith.addf %176, %250 : vector<8x32xf32>
    %c6 = arith.constant 6 : index
    %c0_92 = arith.constant 0 : index
    %252 = vector.load %arg4[%c6, %c0_92] : memref<10x32xf32, #tpu.memory_space<vmem>>, vector<1x32xf32>
    %c7 = arith.constant 7 : index
    %c0_93 = arith.constant 0 : index
    %253 = vector.load %arg4[%c7, %c0_93] : memref<10x32xf32, #tpu.memory_space<vmem>>, vector<1x32xf32>
    %cst_94 = arith.constant dense<0.000000e+00> : vector<8xf32>
    %254 = vector.multi_reduction <add>, %251, %cst_94 [1] : vector<8x32xf32> to vector<8xf32>
    %255 = vector.shape_cast %254 : vector<8xf32> to vector<8x1xf32>
    %cst_95 = arith.constant 3.200000e+01 : f32
    %256 = vector.broadcast %cst_95 : f32 to vector<8x1xf32>
    %257 = arith.divf %255, %256 : vector<8x1xf32>
    %258 = vector.broadcast %257 : vector<8x1xf32> to vector<8x32xf32>
    %259 = arith.subf %251, %258 : vector<8x32xf32>
    %260 = arith.mulf %259, %259 : vector<8x32xf32>
    %cst_96 = arith.constant dense<0.000000e+00> : vector<8xf32>
    %261 = vector.multi_reduction <add>, %260, %cst_96 [1] : vector<8x32xf32> to vector<8xf32>
    %262 = vector.shape_cast %261 : vector<8xf32> to vector<8x1xf32>
    %cst_97 = arith.constant 3.200000e+01 : f32
    %263 = vector.broadcast %cst_97 : f32 to vector<8x1xf32>
    %264 = arith.divf %262, %263 : vector<8x1xf32>
    %265 = vector.broadcast %257 : vector<8x1xf32> to vector<8x32xf32>
    %266 = arith.subf %251, %265 : vector<8x32xf32>
    %cst_98 = arith.constant 9.99999974E-6 : f32
    %267 = vector.broadcast %cst_98 : f32 to vector<8x1xf32>
    %268 = arith.addf %264, %267 : vector<8x1xf32>
    %269 = math.rsqrt %268 : vector<8x1xf32>
    %270 = vector.broadcast %269 : vector<8x1xf32> to vector<8x32xf32>
    %271 = arith.mulf %266, %270 : vector<8x32xf32>
    %272 = vector.broadcast %252 : vector<1x32xf32> to vector<8x32xf32>
    %273 = arith.mulf %271, %272 : vector<8x32xf32>
    %274 = vector.broadcast %253 : vector<1x32xf32> to vector<8x32xf32>
    %275 = arith.addf %273, %274 : vector<8x32xf32>
    %c0_99 = arith.constant 0 : index
    %c0_100 = arith.constant 0 : index
    %276 = vector.load %arg17[%c0_99, %c0_100] : memref<32x128xbf16, #tpu.memory_space<vmem>>, vector<32x128xbf16>
    %277 = arith.truncf %275 : vector<8x32xf32> to vector<8x32xbf16>
    %cst_101 = arith.constant dense<0.000000e+00> : vector<8x128xf32>
    %278 = tpu.matmul %277, %276, %cst_101 {dimension_numbers = #tpu.dot_dimension_numbers<[1], [0], [0], [1], [0, 0, 1, 1], [], []>} : vector<8x32xbf16>, vector<32x128xbf16>, vector<8x128xf32> -> vector<8x128xf32>
    %c1_102 = arith.constant 1 : index
    %c0_103 = arith.constant 0 : index
    %279 = vector.load %arg6[%c1_102, %c0_103] : memref<3x128xf32, #tpu.memory_space<vmem>>, vector<1x128xf32>
    %280 = vector.broadcast %279 : vector<1x128xf32> to vector<8x128xf32>
    %281 = arith.addf %278, %280 : vector<8x128xf32>
    %282 = arith.negf %281 : vector<8x128xf32>
    %283 = math.exp %282 : vector<8x128xf32>
    %cst_104 = arith.constant 1.000000e+00 : f32
    %284 = vector.broadcast %cst_104 : f32 to vector<8x128xf32>
    %285 = arith.addf %284, %283 : vector<8x128xf32>
    %286 = arith.divf %284, %285 : vector<8x128xf32>
    %287 = arith.mulf %281, %286 : vector<8x128xf32>
    %c0_105 = arith.constant 0 : index
    %c0_106 = arith.constant 0 : index
    %288 = vector.load %arg18[%c0_105, %c0_106] : memref<128x32xbf16, #tpu.memory_space<vmem>>, vector<128x32xbf16>
    %289 = arith.truncf %287 : vector<8x128xf32> to vector<8x128xbf16>
    %cst_107 = arith.constant dense<0.000000e+00> : vector<8x32xf32>
    %290 = tpu.matmul %289, %288, %cst_107 {dimension_numbers = #tpu.dot_dimension_numbers<[1], [0], [0], [1], [0, 0, 1, 1], [], []>} : vector<8x128xbf16>, vector<128x32xbf16>, vector<8x32xf32> -> vector<8x32xf32>
    %c6_108 = arith.constant 6 : index
    %c0_109 = arith.constant 0 : index
    %291 = vector.load %arg5[%c6_108, %c0_109] : memref<7x32xf32, #tpu.memory_space<vmem>>, vector<1x32xf32>
    %292 = vector.broadcast %291 : vector<1x32xf32> to vector<8x32xf32>
    %293 = arith.addf %290, %292 : vector<8x32xf32>
    %cst_110 = arith.constant 5.000000e-01 : f32
    %294 = vector.broadcast %cst_110 : f32 to vector<8x32xf32>
    %295 = arith.mulf %294, %293 : vector<8x32xf32>
    %296 = vector.broadcast %3 : vector<8x1xf32> to vector<8x32xf32>
    %297 = arith.mulf %295, %296 : vector<8x32xf32>
    %298 = arith.addf %251, %297 : vector<8x32xf32>
    %c8 = arith.constant 8 : index
    %c0_111 = arith.constant 0 : index
    %299 = vector.load %arg4[%c8, %c0_111] : memref<10x32xf32, #tpu.memory_space<vmem>>, vector<1x32xf32>
    %c9 = arith.constant 9 : index
    %c0_112 = arith.constant 0 : index
    %300 = vector.load %arg4[%c9, %c0_112] : memref<10x32xf32, #tpu.memory_space<vmem>>, vector<1x32xf32>
    %cst_113 = arith.constant dense<0.000000e+00> : vector<8xf32>
    %301 = vector.multi_reduction <add>, %298, %cst_113 [1] : vector<8x32xf32> to vector<8xf32>
    %302 = vector.shape_cast %301 : vector<8xf32> to vector<8x1xf32>
    %cst_114 = arith.constant 3.200000e+01 : f32
    %303 = vector.broadcast %cst_114 : f32 to vector<8x1xf32>
    %304 = arith.divf %302, %303 : vector<8x1xf32>
    %305 = vector.broadcast %304 : vector<8x1xf32> to vector<8x32xf32>
    %306 = arith.subf %298, %305 : vector<8x32xf32>
    %307 = arith.mulf %306, %306 : vector<8x32xf32>
    %cst_115 = arith.constant dense<0.000000e+00> : vector<8xf32>
    %308 = vector.multi_reduction <add>, %307, %cst_115 [1] : vector<8x32xf32> to vector<8xf32>
    %309 = vector.shape_cast %308 : vector<8xf32> to vector<8x1xf32>
    %cst_116 = arith.constant 3.200000e+01 : f32
    %310 = vector.broadcast %cst_116 : f32 to vector<8x1xf32>
    %311 = arith.divf %309, %310 : vector<8x1xf32>
    %312 = vector.broadcast %304 : vector<8x1xf32> to vector<8x32xf32>
    %313 = arith.subf %298, %312 : vector<8x32xf32>
    %cst_117 = arith.constant 9.99999974E-6 : f32
    %314 = vector.broadcast %cst_117 : f32 to vector<8x1xf32>
    %315 = arith.addf %311, %314 : vector<8x1xf32>
    %316 = math.rsqrt %315 : vector<8x1xf32>
    %317 = vector.broadcast %316 : vector<8x1xf32> to vector<8x32xf32>
    %318 = arith.mulf %313, %317 : vector<8x32xf32>
    %319 = vector.broadcast %299 : vector<1x32xf32> to vector<8x32xf32>
    %320 = arith.mulf %318, %319 : vector<8x32xf32>
    %321 = vector.broadcast %300 : vector<1x32xf32> to vector<8x32xf32>
    %322 = arith.addf %320, %321 : vector<8x32xf32>
    %323 = vector.shape_cast %322 : vector<8x32xf32> to vector<1x8x32xf32>
    %c0_118 = arith.constant 0 : index
    %c0_119 = arith.constant 0 : index
    %c0_120 = arith.constant 0 : index
    %324 = vector.load %arg19[%c0_118, %c0_119, %c0_120] : memref<1x8x32xf32, #tpu.memory_space<vmem>>, vector<1x8x32xf32>
    tpu.vector_store %arg19[%c0_118, %c0_119, %c0_120], %323 {strides = array<i32>} : memref<1x8x32xf32, #tpu.memory_space<vmem>>, vector<1x8x32xf32>,
    return
  }
  func.func @transform_0(%arg0: i32) -> (i32, i32, i32) {
    %c0_i32 = arith.constant 0 : i32
    %c0_i32_0 = arith.constant 0 : i32
    %c0_i32_1 = arith.constant 0 : i32
    return %arg0, %c0_i32, %c0_i32_0 : i32, i32, i32
  }
  func.func @transform_1(%arg0: i32) -> (i32, i32, i32) {
    %c0_i32 = arith.constant 0 : i32
    %c0_i32_0 = arith.constant 0 : i32
    %c0_i32_1 = arith.constant 0 : i32
    return %arg0, %c0_i32, %c0_i32_0 : i32, i32, i32
  }
  func.func @transform_2(%arg0: i32) -> (i32, i32, i32) {
    %c0_i32 = arith.constant 0 : i32
    %c0_i32_0 = arith.constant 0 : i32
    %c0_i32_1 = arith.constant 0 : i32
    return %arg0, %c0_i32, %c0_i32_0 : i32, i32, i32
  }
  func.func @transform_3(%arg0: i32) -> (i32, i32) {
    %c0_i32 = arith.constant 0 : i32
    %c0_i32_0 = arith.constant 0 : i32
    %c0_i32_1 = arith.constant 0 : i32
    return %c0_i32, %c0_i32_0 : i32, i32
  }
  func.func @transform_4(%arg0: i32) -> (i32, i32) {
    %c0_i32 = arith.constant 0 : i32
    %c0_i32_0 = arith.constant 0 : i32
    %c0_i32_1 = arith.constant 0 : i32
    return %c0_i32, %c0_i32_0 : i32, i32
  }
  func.func @transform_5(%arg0: i32) -> (i32, i32) {
    %c0_i32 = arith.constant 0 : i32
    %c0_i32_0 = arith.constant 0 : i32
    %c0_i32_1 = arith.constant 0 : i32
    return %c0_i32, %c0_i32_0 : i32, i32
  }
  func.func @transform_6(%arg0: i32) -> (i32, i32) {
    %c0_i32 = arith.constant 0 : i32
    %c0_i32_0 = arith.constant 0 : i32
    %c0_i32_1 = arith.constant 0 : i32
    return %c0_i32, %c0_i32_0 : i32, i32
  }
  func.func @transform_7(%arg0: i32) -> (i32, i32) {
    %c0_i32 = arith.constant 0 : i32
    %c0_i32_0 = arith.constant 0 : i32
    %c0_i32_1 = arith.constant 0 : i32
    return %c0_i32, %c0_i32_0 : i32, i32
  }
  func.func @transform_8(%arg0: i32) -> (i32, i32, i32) {
    %c0_i32 = arith.constant 0 : i32
    %c0_i32_0 = arith.constant 0 : i32
    %c0_i32_1 = arith.constant 0 : i32
    %c0_i32_2 = arith.constant 0 : i32
    return %c0_i32, %c0_i32_0, %c0_i32_1 : i32, i32, i32
  }
  func.func @transform_9(%arg0: i32) -> (i32, i32, i32) {
    %c0_i32 = arith.constant 0 : i32
    %c0_i32_0 = arith.constant 0 : i32
    %c0_i32_1 = arith.constant 0 : i32
    %c0_i32_2 = arith.constant 0 : i32
    return %c0_i32, %c0_i32_0, %c0_i32_1 : i32, i32, i32
  }
  func.func @transform_10(%arg0: i32) -> (i32, i32, i32) {
    %c0_i32 = arith.constant 0 : i32
    %c0_i32_0 = arith.constant 0 : i32
    %c0_i32_1 = arith.constant 0 : i32
    %c0_i32_2 = arith.constant 0 : i32
    return %c0_i32, %c0_i32_0, %c0_i32_1 : i32, i32, i32
  }
  func.func @transform_11(%arg0: i32) -> (i32, i32, i32) {
    %c0_i32 = arith.constant 0 : i32
    %c0_i32_0 = arith.constant 0 : i32
    %c0_i32_1 = arith.constant 0 : i32
    %c0_i32_2 = arith.constant 0 : i32
    return %c0_i32, %c0_i32_0, %c0_i32_1 : i32, i32, i32
  }
  func.func @transform_12(%arg0: i32) -> (i32, i32) {
    %c0_i32 = arith.constant 0 : i32
    %c0_i32_0 = arith.constant 0 : i32
    %c0_i32_1 = arith.constant 0 : i32
    return %c0_i32, %c0_i32_0 : i32, i32
  }
  func.func @transform_13(%arg0: i32) -> (i32, i32) {
    %c0_i32 = arith.constant 0 : i32
    %c0_i32_0 = arith.constant 0 : i32
    %c0_i32_1 = arith.constant 0 : i32
    return %c0_i32, %c0_i32_0 : i32, i32
  }
  func.func @transform_14(%arg0: i32) -> (i32, i32) {
    %c0_i32 = arith.constant 0 : i32
    %c0_i32_0 = arith.constant 0 : i32
    %c0_i32_1 = arith.constant 0 : i32
    return %c0_i32, %c0_i32_0 : i32, i32
  }
  func.func @transform_15(%arg0: i32) -> (i32, i32) {
    %c0_i32 = arith.constant 0 : i32
    %c0_i32_0 = arith.constant 0 : i32
    %c0_i32_1 = arith.constant 0 : i32
    return %c0_i32, %c0_i32_0 : i32, i32
  }
  func.func @transform_16(%arg0: i32) -> (i32, i32) {
    %c0_i32 = arith.constant 0 : i32
    %c0_i32_0 = arith.constant 0 : i32
    %c0_i32_1 = arith.constant 0 : i32
    return %c0_i32, %c0_i32_0 : i32, i32
  }
  func.func @transform_17(%arg0: i32) -> (i32, i32) {
    %c0_i32 = arith.constant 0 : i32
    %c0_i32_0 = arith.constant 0 : i32
    %c0_i32_1 = arith.constant 0 : i32
    return %c0_i32, %c0_i32_0 : i32, i32
  }
  func.func @transform_18(%arg0: i32) -> (i32, i32, i32) {
    %c0_i32 = arith.constant 0 : i32
    %c0_i32_0 = arith.constant 0 : i32
    %c0_i32_1 = arith.constant 0 : i32
    return %arg0, %c0_i32, %c0_i32_0 : i32, i32, i32
  }
}

</mosaic_0001>

<bundles_post_ra>
// kernel: tpu_custom_call.1
= control target key start
LH: loop header
LB: loop body
LE: loop exit
PB: predicated region body
PF: predicated region fallthrough
CT: control target
= control target key end

     0   :  { %s3008_s0 = inlined_call_operand.vmem [shape: f32[2,8,32], index: 0, kind: input, shape index: {}]   ;;  %s3009_s1 = inlined_call_operand.vmem [shape: f32[2,8,1], index: 1, kind: input, shape index: {}]   ;;  %s3010_s2 = inlined_call_operand.vmem [shape: f32[2,1,8], index: 2, kind: input, shape index: {}]   ;;  %s3011_s3 = inlined_call_operand.vmem [shape: f32[10,32], index: 3, kind: input, shape index: {}]   ;;  %s3012_s4 = inlined_call_operand.vmem [shape: f32[7,32], index: 4, kind: input, shape index: {}]   ;;  %s3013_s5 = inlined_call_operand.vmem [shape: f32[3,128], index: 5, kind: input, shape index: {}]   ;;  %s3014_s6 = inlined_call_operand.vmem [shape: bf16[32,128], index: 6, kind: input, shape index: {}]   ;;  %s3015_s7 = inlined_call_operand.vmem [shape: bf16[128,32], index: 7, kind: input, shape index: {}]   ;;  %s3016_s8 = inlined_call_operand.vmem [shape: bf16[4,32,24], index: 8, kind: input, shape index: {}]   ;;  %s3017_s9 = inlined_call_operand.vmem [shape: f32[4,2,8], index: 9, kind: input, shape index: {}]   ;;  %s3018_s10 = inlined_call_operand.vmem [shape: f32[4,1,24], index: 10, kind: input, shape index: {}]   ;;  %s3019_s11 = inlined_call_operand.vmem [shape: bf16[4,16,8], index: 11, kind: input, shape index: {}]   ;;  %s3020_s12 = inlined_call_operand.vmem [shape: bf16[32,32], index: 12, kind: input, shape index: {}]   ;;  %s3021_s13 = inlined_call_operand.vmem [shape: bf16[32,64], index: 13, kind: input, shape index: {}]   ;;  %s3022_s14 = inlined_call_operand.vmem [shape: f32[3,32], index: 14, kind: input, shape index: {}]   ;;  %s3023_s15 = inlined_call_operand.vmem [shape: bf16[32,32], index: 15, kind: input, shape index: {}]   ;;  %s3024_s16 = inlined_call_operand.vmem [shape: bf16[32,128], index: 16, kind: input, shape index: {}]   ;;  %s3025_s17 = inlined_call_operand.vmem [shape: bf16[128,32], index: 17, kind: input, shape index: {}]   ;;  %s3026_s18 = inlined_call_operand.hbm [shape: f32[2,8,32], index: 18, kind: output, shape index: {}]  }
   0x1   :  { %3035 = sst [smem:[#allocation11_spill]] %s3008_s0 }
   0x2   :  { %3036 = sst [smem:[#allocation12_spill]] %s3009_s1 }
   0x3   :  { %3037 = sst [smem:[#allocation13_spill]] %s3010_s2 }
   0x4   :  { %3038 = sst [smem:[#allocation14_spill]] %s3011_s3 }
   0x5   :  { %3039 = sst [smem:[#allocation15_spill]] %s3014_s6 }
   0x6   :  { %23 = vsyncpa [#allocation3], 0 }
   0x7   :  { %25 = vsyncpa [#allocation3 + $0x1], 0  ;;  %s2492_s27 = smov 0   ;;  %s2494_s28 = smov 0  }
   0x8   :  { %s2496_s29 = smov 0   ;;  %s2498_s30 = smov 0  }
   0x9 LB: > { %3040 = sst [smem:[#allocation5_spill]] %s2369_s27  ;;  %s2513_s0 = sadd.s32 4294967295, %s2381_s30   ;;  %s2381_s30 = sphi %s2498_s30, %s3064_s30   ;;  %s2377_s29 = sphi %s2496_s29, %s3066_s29   ;;  %s2373_s28 = sphi %s2494_s28, %s3068_s28   ;;  %s2369_s27 = sphi %s2492_s27, %s3067_s27  }
   0xa   : > { %3041 = sst [smem:[#allocation6_spill]] %s2377_s29  ;;  %s1966_s19 = sadd.s32 4294967294, %s2381_s30  }
   0xb   : > { %3042 = sst [smem:[#allocation7_spill]] %s2381_s30  ;;  %s2517_s1 = sadd.s32 1, %s2381_s30  }
   0xc   : > { %3043 = sst [smem:[#allocation8_spill]] %s2517_s1  ;;  %s431_s20 = sadd.s32 1, %s2377_s29 }
   0xd   : > { %s428_s21 = ssub.s32 %s2381_s30, %s2517_s1  ;;  %p441_p0 = scmp.ne.s32.totalorder %s2377_s29, %s2373_s28 }
   0xe   : > { %p429_p1 = scmp.eq.s32.totalorder %s428_s21, 0  ;;  %p442_p2 = scmp.eq.s32.totalorder %s2513_s0, 1 }
   0xf   : > { %p447_p3 = scmp.ne.s32.totalorder %s2373_s28, %s2369_s27  ;;  %p448_p4 = scmp.eq.s32.totalorder %s1966_s19, 1 }
  0x10   : > { %s2528_s22 = scalar_select %p429_p1, %s2377_s29, %s431_s20  }
  0x11   : > { %p2530_p5 = por %p442_p2, %p441_p0  ;;  %p2534_p6 = por %p448_p4, %p447_p3 }
  0x12   : > { %3044 = sst [smem:[#allocation9_spill]] %s2528_s22  ;;  %p1969_p7 = scmp.ge.s32.totalorder %s2381_s30, 1 }
  0x13   : > { %s3046_s23 = scalar_select %p2534_p6, 1, 0 }
  0x14   : > { %p531_p8 = scmp.lt.s32.totalorder %s2381_s30, 3 }
  0x15   : > { %3047 = sst [smem:[#allocation10_spill]] %s3046_s23 }
  0x16   : > { %p532_p9 = pnand %p1969_p7, %p531_p8 }
  0x17   : > { %p591_p10 = scmp.lt.s32.totalorder (!%p532_p9), %s2513_s0, 1  ;;  %s3048_s20 = sld [smem:[#allocation13_spill]] (!%p532_p9) }
  0x18   : > { %535 = sbr.rel (%p532_p9) target bundleno = 3724 (0xe8c), region = 92  ;;  %s3049_s1 = sld [smem:[#allocation11_spill]] (!%p532_p9) }
  0x19   : > { %s3050_s6 = sld [smem:[#allocation15_spill]] (!%p532_p9)  ;;  %s2386_s27 = smov (!%p532_p9), 15  }
  0x1a   : > { %s3051_s3 = sld [smem:[#allocation14_spill]] (!%p532_p9)  ;;  %s2388_s21 = smov (!%p532_p9), 14  }
  0x1b   : > { %s2389_s26 = smov (!%p532_p9), 126   ;;  %s2390_s19 = smov (!%p532_p9), 124  }
  0x1c   : > { %s2391_s29 = smov (!%p532_p9), 12  }
  0x1d   : > { %s2542_s24 = scalar_select %p591_p10, %s2513_s0, 1  ;;  %vm608_vm0 = vcmask 261120   ;;  %v2383_v2 = vmov 32.0   ;;  %v2162_v32 = vld [vmem:[%s3015_s7 + $0x38] sm:$0xff]  ;;  %v2161_v33 = vld [vmem:[%s3015_s7 + $0x30] sm:$0xff]  ;;  %v2160_v34 = vld [vmem:[%s3015_s7 + $0x28] sm:$0xff] }
  0x1e   : > { %2279 = vrcp.f32 %v2383_v2  ;;  %764 = vmatpush.bf16.msra.mxu1 %v2162_v32  ;;  %v2159_v35 = vld [vmem:[%s3015_s7 + $0x20] sm:$0xff]  ;;  %v2158_v36 = vld [vmem:[%s3015_s7 + $0x18] sm:$0xff]  ;;  %v2157_v37 = vld [vmem:[%s3015_s7 + $0x10] sm:$0xff]  ;;  %v2384_v45 = vmov 0   ;;  %vm998_vm12 = vcmask 64512   ;;  %vm1121_vm13 = vcmask 121856  }
  0x1f   : > { %s3032_s25 = sshll.u32 %s2542_s24, 3  ;;  %v2154_v14 = vld [vmem:[%s3050_s6 + $0x8] sm:$0xff]  ;;  %v2153_v15 = vld [vmem:[%s3050_s6] sm:$0xff]  ;;  %s3052_s6 = sshll.u32 %s2542_s24, 3  ;;  %2244 = vset.pattern.permute.xlu1 %v2384_v45  ;;  %2245 = vset.pattern.permute.xlu0 %v2384_v45  ;;  %vm1162_vm15 = vcmask 113664  }
  0x20   : > { %s594_s23 = scalar_lea.vmem %s3049_s1, %s3032_s25  ;;  %670 = vmatpush.bf16.msra.mxu0 %v2154_v14  ;;  %v2247_v25 = vld [vmem:[%s3051_s3] ss:$0 sm:$0xff]  ;;  %v2248_v28 = vld [vmem:[%s3051_s3 + $0x1] ss:$0 sm:$0xff]  ;;  %v2156_v38 = vld [vmem:[%s3015_s7 + $0x8] sm:$0xff]  ;;  %s3053_s25 = sld [smem:[#allocation12_spill]] }
  0x21   : > { %v2554_v0 = vld [vmem:[%s594_s23] sm:$0xff]  ;;  %v2168_v14 = vld [vmem:[%s3016_s8 + $0x28] sm:$0xff]  ;;  %s2385_s23 = smov 120   ;;  %s3058_s22 = scalar_lea.vmem %s3048_s20, %s2542_s24 }
  0x22   : > { %v609_v1 = vsel %vm608_vm0, %v2554_v0, 0.0  ;;  %765 = vmatpush.bf16.msra.mxu1 %v2161_v33  ;;  %v2155_v39 = vld [vmem:[%s3015_s7] sm:$0xff]  ;;  %s2392_s24 = smov 112  }
  0x23   : > { %610 = vadd.xlane.f32.xlu0 %v609_v1  ;;  %v2249_v40 = vld [vmem:[%s3013_s5] ss:$0 sm:$0xff]  ;;  %v2252_v32 = vld [vmem:[%s3051_s3 + $0x3] ss:$0 sm:$0xff]  ;;  %v2255_v45 = vld [vmem:[%s3017_s9 + $0x5] ss:$0 sm:$0xff] }
  0x24   : > { %v2280_v3 = vpop.eup %2279  ;;  %671 = vmatpush.bf16.msra.mxu0 %v2153_v15  ;;  %v2250_v61 = vld [vmem:[%s3012_s4] ss:$0 sm:$0xff] }
  0x25   : > { %v613_v4 = vmul.f32 32.0, %v2280_v3  ;;  %vm617_vm1 = vweird.f32 %v2280_v3  ;;  %v2163_v15 = vld [vmem:[%s3016_s8] sm:$0xff] }
  0x26   : > { %766 = vmatpush.bf16.msra.mxu1 %v2160_v34  ;;  %s598_s30 = scalar_lea.vmem %s3053_s25, %s3052_s6  ;;  %s2394_s25 = smov 8  }
  0x27   : > { %v614_v5 = vsub.f32 1.0, %v613_v4  ;;  %v604_v44 = vld [vmem:[%s598_s30] sm:$0xff]  ;;  %s2387_s30 = smov 127  }
  0x28   : > { %780 = vperm.xlu1 %2244, %v604_v44   ;;  %917 = vmatpush.bf16.msrb.mxu0 %v2168_v14  ;;  %v2253_v44 = vld [vmem:[%s3018_s10 + $0x2] ss:$0 sm:$0xff]  ;;  %v2264_v14 = vld [vmem:[%s3017_s9 + $0x7] ss:$0 sm:$0xff] }
  0x29   : > { %v615_v6 = vmul.f32 %v2280_v3, %v614_v5 }
  0x2a   : > { %767 = vmatpush.bf16.msra.mxu1 %v2159_v35 }
  0x2b   : > { %v616_v7 = vadd.f32 %v2280_v3, %v615_v6 }
  0x2d   : > { %v2558_v8 = vsel %vm617_vm1, %v2280_v3, %v616_v7 }
  0x2e   : > { %768 = vmatpush.bf16.msra.mxu1 %v2158_v36  ;;  %v2173_v36 = vld [vmem:[%s3019_s11 + $0x10] sm:$0xff] }
  0x32   : > { %769 = vmatpush.bf16.msra.mxu1 %v2157_v37  ;;  %v1051_v37 = vsel %vm998_vm12, %v2173_v36, 0 }
  0x36   : > { %770 = vmatpush.bf16.msra.mxu1 %v2156_v38  ;;  %v2171_v38 = vld [vmem:[%s3019_s11] sm:$0xff] }
  0x3a   : > { %771 = vmatpush.bf16.msra.mxu1 %v2155_v39  ;;  %v2172_v39 = vld [vmem:[%s3019_s11 + $0x8] sm:$0xff] }
  0x96   : > { %v611_v9 = vpop.xlane.xlu0 %610 }
  0x97   : > { %v619_v10 = vmul.f32 %v2558_v8, %v611_v9 }
  0x99   : > { %v620_v11 = vsub.f32 %v2554_v0, %v619_v10 }
  0x9a   : > { %v2612_v1 = vpop.permute.xlu1 %780 }
  0x9b   : > { %v621_v12 = vmul.f32 %v620_v11, %v620_v11 }
  0x9d   : > { %v622_v13 = vsel %vm608_vm0, %v621_v12, 0.0 }
  0x9e   : > { %623 = vadd.xlane.f32.xlu0 %v622_v13  ;;  %v2164_v13 = vld [vmem:[%s3016_s8 + $0x8] sm:$0xff] }
  0x9f   : > { %867 = vmatpush.bf16.msra.mxu2 %v2164_v13 }
  0xa3   : > { %868 = vmatpush.bf16.msra.mxu2 %v2163_v15 }
 0x111   : > { %v624_v16 = vpop.xlane.xlu0 %623 }
 0x112   : > { %v625_v17 = vmul.f32 %v624_v16, %v2558_v8  ;;  %v2165_v16 = vld [vmem:[%s3016_s8 + $0x10] sm:$0xff] }
 0x114   : > { %v626_v18 = vadd.f32 1e-05, %v625_v17  ;;  %v2167_v17 = vld [vmem:[%s3016_s8 + $0x20] sm:$0xff] }
 0x115   : > { %918 = vmatpush.bf16.msrb.mxu0 %v2167_v17 }
 0x116   : > { %2281 = vrsqrt.f32 %v626_v18  ;;  %vm633_vm3 = vweird.f32 %v626_v18 }
 0x11c   : > { %v2282_v19 = vpop.eup %2281 }
 0x11d   : > { %v628_v20 = vmul.f32 %v2282_v19, %v626_v18  ;;  %vm634_vm2 = vweird.f32 %v2282_v19 }
 0x11e   : > { %vm635_vm4 = vmor %vm633_vm3, %vm634_vm2  ;;  %vm1203_vm2 = vcmask 97280  }
 0x11f   : > { %v629_v21 = vmul.f32 %v2282_v19, %v628_v20 }
 0x121   : > { %v630_v22 = vmul.f32 0.5, %v629_v21  ;;  %v2169_v21 = vld [vmem:[%s3016_s8 + $0x30] sm:$0xff] }
 0x123   : > { %v631_v23 = vsub.f32 1.5, %v630_v22 }
 0x125   : > { %v632_v24 = vmul.f32 %v2282_v19, %v631_v23 }
 0x127   : > { %v636_v26 = vsel %vm635_vm4, %v2282_v19, %v632_v24  ;;  %v2170_v19 = vld [vmem:[%s3016_s8 + $0x38] sm:$0xff] }
 0x128   : > { %v637_v27 = vmul.f32 %v636_v26, %v620_v11  ;;  %942 = vmatpush.bf16.msrb.mxu2 %v2170_v19 }
 0x12a   : > { %v639_v29 = vmul.f32 %v2247_v25, %v637_v27 }
 0x12c   : > { %v641_v30 = vadd.f32 %v2248_v28, %v639_v29  ;;  %943 = vmatpush.bf16.msrb.mxu2 %v2169_v21  ;;  %v2251_v29 = vld [vmem:[%s3051_s3 + $0x2] ss:$0 sm:$0xff] }
 0x12e   : > { %v646_v31 = vpack.c.bf16 %v641_v30, %v641_v30 }
 0x130   : > { %1981 = vmatmul.msk.bf16.vlgmr.msra.gmra.mxu0 %vm608_vm0, %v646_v31 }
 0x1ad   : > { %v673_v41 = vpop.f32.mrf.mxu0 }
 0x1ae   : > { %v674_v42 = vadd.f32 %v2249_v40, %v673_v41  ;;  %v1003_v40 = vsel %vm998_vm12, %v2171_v38, 0  ;;  %v1027_v41 = vsel %vm998_vm12, %v2172_v39, 0  ;;  %v2260_v38 = vld [vmem:[%s3017_s9 + $0x2] ss:$0 sm:$0xff] }
 0x1af   : > { %1036 = vmatpush.bf16.xpose.msra.mxu0 %v1027_v41 }
 0x1b0   : > { %v1982_v43 = vmul.f32 -1.442695, %v674_v42 }
 0x1b2   : > { %2283 = vpow2.f32 %v1982_v43 }
 0x1b5   : > { %v675_v46 = vpop.f32.mrf.mxu0 }
 0x1b8   : > { %v2284_v47 = vpop.eup %2283 }
 0x1b9   : > { %v680_v48 = vadd.f32 1.0, %v2284_v47 }
 0x1bb   : > { %2285 = vrcp.f32 %v680_v48  ;;  %v692_v52 = vand.u32 2147483648, %v680_v48  ;;  %v690_v54 = vand.u32 2147483647, %v680_v48  ;;  %vm686_vm6 = vweird.f32 %v680_v48 }
 0x1bd   : > { %v693_v56 = vor.u32 1.1754944e-38, %v692_v52  ;;  %vm691_vm8 = vcmp.eq.f32.partialorder %v690_v54, 8.507059e+37  ;;  %v2258_v52 = vld [vmem:[%s3017_s9 + $0x1] ss:$0 sm:$0xff] }
 0x1c1   : > { %v2286_v49 = vpop.eup %2285 }
 0x1c2   : > { %v682_v50 = vmul.f32 %v2286_v49, %v680_v48  ;;  %vm687_vm5 = vweird.f32 %v2286_v49  ;;  %v2256_v48 = vld [vmem:[%s3018_s10] ss:$0 sm:$0xff] }
 0x1c3   : > { %vm688_vm7 = vmor %vm686_vm6, %vm687_vm5  ;;  %vm1376_vm5 = vcmask 1043456   ;;  %vm1469_vm6 = vcmask 130048  }
 0x1c4   : > { %v683_v51 = vsub.f32 1.0, %v682_v50 }
 0x1c6   : > { %v684_v53 = vmul.f32 %v2286_v49, %v683_v51 }
 0x1c8   : > { %v685_v55 = vadd.f32 %v2286_v49, %v684_v53  ;;  %v2261_v53 = vld [vmem:[%s3017_s9 + $0x3] ss:$0 sm:$0xff] }
 0x1ca   : > { %v689_v57 = vsel %vm688_vm7, %v2286_v49, %v685_v55  ;;  %v2259_v49 = vld [vmem:[%s3018_s10 + $0x1] ss:$0 sm:$0xff]  ;;  %vm1471_vm7 = vcmask 195584  }
 0x1cb   : > { %v694_v58 = vsel %vm691_vm8, %v693_v56, %v689_v57 }
 0x1cc   : > { %v696_v59 = vmul.f32 %v694_v58, %v674_v42  ;;  %v2174_v42 = vld [vmem:[%s3019_s11 + $0x18] sm:$0xff] }
 0x1cd   : > { %v1075_v43 = vsel %vm998_vm12, %v2174_v42, 0 }
 0x1ce   : > { %v713_v60 = vpack.c.bf16 %v696_v59, %v696_v59 }
 0x1d0   : > { %772 = vmatmul.bf16.vlgmr.msra.gmra.mxu1 %v713_v60 }
 0x24d   : > { %v773_v62 = vpop.f32.mrf.mxu1 }
 0x24e   : > { %v774_v63 = vadd.f32 %v2250_v61, %v773_v62 }
 0x250   : > { %v777_v2 = vmul.f32 0.5, %v774_v63 }
 0x252   : > { %v783_v3 = vmul.f32 %v2612_v1, %v777_v2 }
 0x254   : > { %v2616_v4 = vadd.f32 %v783_v3, %v2554_v0  ;;  %v2166_v0 = vld [vmem:[%s3016_s8 + $0x18] sm:$0xff] }
 0x255   : > { %v775_v5 = vpop.f32.mrf.mxu1  ;;  %892 = vmatpush.bf16.msra.mxu3 %v2166_v0  ;;  %v2262_v0 = vld [vmem:[%s3018_s10 + $0x3] ss:$0 sm:$0xff] }
 0x256   : > { %v787_v6 = vsel %vm608_vm0, %v2616_v4, 0.0 }
 0x257   : > { %788 = vadd.xlane.f32.xlu1 %v787_v6 }
 0x259   : > { %893 = vmatpush.bf16.msra.mxu3 %v2165_v16 }
 0x25d   : > { %1012 = vmatpush.bf16.xpose.msrb.mxu3 %v1003_v40 }
 0x2ca   : > { %v789_v7 = vpop.xlane.xlu1 %788 }
 0x2cb   : > { %v790_v9 = vmul.f32 %v789_v7, %v2558_v8 }
 0x2cd   : > { %v791_v10 = vsub.f32 %v2616_v4, %v790_v9 }
 0x2cf   : > { %v792_v11 = vmul.f32 %v791_v10, %v791_v10 }
 0x2d1   : > { %v793_v12 = vsel %vm608_vm0, %v792_v11, 0.0 }
 0x2d2   : > { %794 = vadd.xlane.f32.xlu2 %v793_v12 }
 0x345   : > { %v795_v18 = vpop.xlane.xlu2 %794 }
 0x346   : > { %v796_v20 = vmul.f32 %v795_v18, %v2558_v8 }
 0x348   : > { %v797_v22 = vadd.f32 1e-05, %v796_v20 }
 0x34a   : > { %2287 = vrsqrt.f32 %v797_v22  ;;  %vm804_vm10 = vweird.f32 %v797_v22 }
 0x350   : > { %v2288_v23 = vpop.eup %2287 }
 0x351   : > { %v799_v24 = vmul.f32 %v2288_v23, %v797_v22  ;;  %vm805_vm9 = vweird.f32 %v2288_v23 }
 0x352   : > { %vm806_vm11 = vmor %vm804_vm10, %vm805_vm9 }
 0x353   : > { %v800_v25 = vmul.f32 %v2288_v23, %v799_v24 }
 0x355   : > { %v801_v26 = vmul.f32 0.5, %v800_v25 }
 0x357   : > { %v802_v27 = vsub.f32 1.5, %v801_v26 }
 0x359   : > { %v803_v28 = vmul.f32 %v2288_v23, %v802_v27 }
 0x35b   : > { %v807_v30 = vsel %vm806_vm11, %v2288_v23, %v803_v28  ;;  %v2257_v23 = vld [vmem:[%s3017_s9] ss:$0 sm:$0xff]  ;;  %v2263_v28 = vld [vmem:[%s3017_s9 + $0x6] ss:$0 sm:$0xff] }
 0x35c   : > { %v808_v31 = vmul.f32 %v807_v30, %v791_v10 }
 0x35e   : > { %v810_v33 = vmul.f32 %v2251_v29, %v808_v31  ;;  %v2254_v31 = vld [vmem:[%s3017_s9 + $0x4] ss:$0 sm:$0xff] }
 0x360   : > { %v812_v34 = vadd.f32 %v2252_v32, %v810_v33 }
 0x362   : > { %v813_v35 = vpack.c.bf16 %v812_v34, %v812_v34 }
 0x364   : > { %2023 = vmatmul.msk.bf16.vlgmr.msra.gmra.mxu2 %vm608_vm0, %v813_v35  ;;  %2032 = vmatmul.msk.bf16.vlgmr.msra.gmra.mxu3 %vm608_vm0, %v813_v35 }
 0x365   : > { %2041 = vmatmul.msk.bf16.vlgmr.msrb.gmra.mxu0 %vm608_vm0, %v813_v35  ;;  %1060 = vmatpush.bf16.xpose.msra.mxu2 %v1051_v37 }
 0x366   : > { %1084 = vmatpush.bf16.xpose.msra.mxu3 %v1075_v43 }
 0x374   : > { %2050 = vmatmul.msk.bf16.vlgmr.msrb.gmra.mxu2 %vm608_vm0, %v813_v35 }
 0x3e2   : > { %v920_v46 = vpop.f32.mrf.mxu0 }
 0x3e3   : > { %v921_v47 = vadd.f32 %v2253_v44, %v920_v46 }
 0x3e5   : > { %v979_v50 = vadd.f32 %v2255_v45, %v921_v47  ;;  %v951_v51 = vpack.c.bf16 %v921_v47, %v921_v47  ;;  %v963_v35 = vadd.f32 %v2254_v31, %v921_v47 }
 0x3e7   : > { %v983_v54 = vpack.c.bf16 %v979_v50, %v979_v50  ;;  %v870_v55 = vpop.f32.mrf.mxu2  ;;  %v895_v56 = vpop.f32.mrf.mxu3  ;;  %v1265_v57 = vunpack.c.l.b16 %v951_v51  ;;  %v967_v37 = vpack.c.bf16 %v963_v35, %v963_v35  ;;  %v1090_v51 = vlaneseq }
 0x3e8   : > { %v871_v58 = vadd.f32 %v2256_v48, %v870_v55  ;;  %v896_v59 = vadd.f32 %v2259_v49, %v895_v56 }
 0x3e9   : > { %2065 = vmatmul.msk.bf16.vlgmr.msra.gmra.mxu2 %vm998_vm12, %v983_v54  ;;  %v2693_v60 = vpack.c.b16 %v1265_v57, %v1265_v57 }
 0x3ea   : > { %v977_v61 = vadd.f32 %v2258_v52, %v871_v58  ;;  %v978_v62 = vadd.f32 %v2261_v53, %v896_v59  ;;  %v922_v63 = vpop.f32.mrf.mxu0  ;;  %v949_v2 = vpack.c.bf16 %v871_v58, %v871_v58  ;;  %v950_v3 = vpack.c.bf16 %v896_v59, %v896_v59 }
 0x3eb   : > { %1267 = vrot.lane.b32.xlu0 %v2693_v60, %s2385_s23  ;;  %v961_v26 = vadd.f32 %v2257_v23, %v871_v58  ;;  %v962_v41 = vadd.f32 %v2260_v38, %v896_v59  ;;  %v1091_v53 = vshrl.u32 %v1090_v51, 7 }
 0x3ec   : > { %v981_v5 = vpack.c.bf16 %v977_v61, %v977_v61  ;;  %v982_v6 = vpack.c.bf16 %v978_v62, %v978_v62  ;;  %v1217_v7 = vunpack.c.l.b16 %v949_v2  ;;  %v1241_v9 = vunpack.c.l.b16 %v950_v3 }
 0x3ed   : > { %v965_v27 = vpack.c.bf16 %v961_v26, %v961_v26  ;;  %v966_v43 = vpack.c.bf16 %v962_v41, %v962_v41  ;;  %v2742_v55 = vsub.s32 7, %v1091_v53 }
 0x3ee   : > { %2055 = vmatmul.msk.bf16.vlgmr.msrb.gmra.mxu3 %vm998_vm12, %v981_v5  ;;  %2060 = vmatmul.msk.bf16.vlgmr.msra.gmra.mxu0 %vm998_vm12, %v982_v6  ;;  %v2698_v12 = vpack.c.b16 %v1217_v7, %v1217_v7  ;;  %v2701_v13 = vpack.c.b16 %v1241_v9, %v1241_v9 }
 0x3ef   : > { %v872_v10 = vpop.f32.mrf.mxu2  ;;  %v897_v11 = vpop.f32.mrf.mxu3  ;;  %v1126_v57 = vand.u32 1, %v2742_v55  ;;  %v1208_v38 = vand.u32 4, %v2742_v55 }
 0x3f0   : > { %1219 = vrot.lane.b32.xlu2 %v2698_v12, %s2385_s23 }
 0x3f1   : > { %vm2745_vm14 = vcmp.ne.s32.totalorder %v1126_v57, 0  ;;  %vm2802_vm3 = vcmp.ne.s32.totalorder %v1208_v38, 0 }
 0x3f3   : > { %1243 = vrot.lane.b32.xlu0 %v2701_v13, %s2385_s23 }
 0x3f7   : > { %v945_v15 = vpop.f32.mrf.mxu2 }
 0x3f8   : > { %v946_v16 = vadd.f32 %v2262_v0, %v945_v15 }
 0x3fa   : > { %v980_v17 = vadd.f32 %v2264_v14, %v946_v16  ;;  %v952_v18 = vpack.c.bf16 %v946_v16, %v946_v16  ;;  %v964_v32 = vadd.f32 %v2263_v28, %v946_v16 }
 0x3fc   : > { %v984_v19 = vpack.c.bf16 %v980_v17, %v980_v17  ;;  %v1289_v20 = vunpack.c.l.b16 %v952_v18  ;;  %v968_v36 = vpack.c.bf16 %v964_v32, %v964_v32  ;;  %v1167_v18 = vand.u32 2, %v2742_v55 }
 0x3fe   : > { %2070 = vmatmul.msk.bf16.vlgmr.msra.gmra.mxu3 %vm998_vm12, %v984_v19  ;;  %v2711_v21 = vpack.c.b16 %v1289_v20, %v1289_v20  ;;  %vm2771_vm1 = vcmp.ne.s32.totalorder %v1167_v18, 0 }
 0x3ff   : > { %v947_v22 = vpop.f32.mrf.mxu2 }
 0x400   : > { %1291 = vrot.lane.b32.xlu2 %v2711_v21, %s2385_s23  ;;  %s2393_s23 = smov 16  }
 0x44a   : > { %v1220_v24 = vpop.permute.xlu2 %1219 }
 0x44b   : > { %v1225_v25 = vsel %vm998_vm12, %v1220_v24, 0 }
 0x44c   : > { %1234 = vmatpush.bf16.xpose.msrb.mxu0 %v1225_v25 }
 0x453   : > { %2071 = vmatmul.msk.bf16.vlgmr.msrb.gmra.mxu0 %vm998_vm12, %v965_v27 }
 0x45a   : > { %v1292_v29 = vpop.permute.xlu2 %1291 }
 0x45b   : > { %v1297_v30 = vsel %vm998_vm12, %v1292_v29, 0 }
 0x45c   : > { %1306 = vmatpush.bf16.xpose.msrb.mxu3 %v1297_v30 }
 0x45d   : > { %v1268_v33 = vpop.permute.xlu0 %1267 }
 0x45e   : > { %v1273_v34 = vsel %vm998_vm12, %v1268_v33, 0 }
 0x45f   : > { %1282 = vmatpush.bf16.xpose.msrb.mxu2 %v1273_v34 }
 0x463   : > { %2074 = vmatmul.msk.bf16.vlgmr.msrb.gmra.mxu3 %vm998_vm12, %v968_v36 }
 0x465   : > { %v1244_v39 = vpop.permute.xlu0 %1243 }
 0x466   : > { %v1249_v40 = vsel %vm998_vm12, %v1244_v39, 0  ;;  %2073 = vmatmul.msk.bf16.vlgmr.msrb.gmra.mxu2 %vm998_vm12, %v967_v37  ;;  %v2246_v39 = vld [vmem:[%s3058_s22] ss:$0 sm:$0xff] }
 0x467   : > { %1258 = vmatpush.bf16.xpose.msra.mxu0 %v1249_v40 }
 0x46b   : > { %v1038_v42 = vpop.f32.mrf.mxu0 }
 0x46c   : > { %v1062_v44 = vpop.f32.mrf.mxu2 }
 0x46d   : > { %1113 = vrot.lane.b32.xlu0 %v1062_v44, %s2386_s27  ;;  %1101 = vrot.lane.b32.xlu2 %v1062_v44, %s2387_s30 }
 0x46e   : > { %2072 = vmatmul.msk.bf16.vlgmr.msra.gmra.mxu0 %vm998_vm12, %v966_v43  ;;  %v1315_v43 = vmul.f32 %v2246_v39, %v2612_v1 }
 0x470   : > { %vm1316_vm4 = vcmp.eq.f32.partialorder %v1315_v43, 0.0 }
 0x471   : > { %v2735_v45 = vpop.f32.mrf.mxu3 }
 0x473   : > { %v1040_v46 = vpop.f32.mrf.mxu0 }
 0x474   : > { %v1064_v47 = vpop.f32.mrf.mxu2 }
 0x475   : > { %1099 = vrot.lane.b32.xlu0 %v1038_v42, %s2387_s30 }
 0x479   : > { %v1016_v48 = vpop.f32.mrf.mxu3 }
 0x481   : > { %v1086_v49 = vpop.f32.mrf.mxu3 }
 0x482   : > { %1115 = vrot.lane.b32.xlu1 %v1086_v49, %s2386_s27  ;;  %1103 = vrot.lane.b32.xlu2 %v1086_v49, %s2387_s30 }
 0x489   : > { %v1088_v50 = vpop.f32.mrf.mxu3 }
 0x48a   : > { %1097 = vrot.lane.b32.xlu1 %v2735_v45, %s2387_s30  ;;  %1111 = vrot.lane.b32.xlu2 %v1038_v42, %s2386_s27 }
 0x4c7   : > { %v1102_v54 = vpop.permute.xlu2 %1101 }
 0x4d0   : > { %v2740_v52 = vpop.f32.mrf.mxu0 }
 0x4d8   : > { %v1238_v56 = vpop.f32.mrf.mxu0 }
 0x4dc   : > { %v1104_v58 = vpop.permute.xlu2 %1103 }
 0x4df   : > { %v1114_v61 = vpop.permute.xlu0 %1113 }
 0x4e0   : > { %v1124_v62 = vsel %vm1121_vm13, %v1102_v54, %v1114_v61 }
 0x4e1   : > { %v1132_v63 = vsel %vm2745_vm14, %v1124_v62, %v1062_v44 }
 0x4e2   : > { %1154 = vrot.lane.b32.xlu2 %v1132_v63, %s2388_s21  ;;  %1142 = vrot.lane.b32.xlu0 %v1132_v63, %s2389_s26 }
 0x4e4   : > { %v1112_v3 = vpop.permute.xlu2 %1111 }
 0x4e6   : > { %v2754_v2 = vpop.f32.mrf.mxu3 }
 0x4e7   : > { %v1100_v5 = vpop.permute.xlu0 %1099 }
 0x4e8   : > { %v1123_v6 = vsel %vm1121_vm13, %v1100_v5, %v1112_v3 }
 0x4e9   : > { %v1284_v7 = vpop.f32.mrf.mxu2  ;;  %v1131_v9 = vsel %vm2745_vm14, %v1123_v6, %v1038_v42 }
 0x4ea   : > { %1152 = vrot.lane.b32.xlu1 %v1131_v9, %s2388_s21 }
 0x4eb   : > { %v2760_v10 = vpop.f32.mrf.mxu0 }
 0x4ee   : > { %v1310_v11 = vpop.f32.mrf.mxu3 }
 0x4f1   : > { %v1286_v0 = vpop.f32.mrf.mxu2 }
 0x4f3   : > { %v1262_v14 = vpop.f32.mrf.mxu0 }
 0x4f4   : > { %v1116_v15 = vpop.permute.xlu1 %1115 }
 0x4f5   : > { %v1125_v16 = vsel %vm1121_vm13, %v1104_v58, %v1116_v15 }
 0x4f6   : > { %v1133_v17 = vsel %vm2745_vm14, %v1125_v16, %v1086_v49 }
 0x4f7   : > { %1156 = vrot.lane.b32.xlu2 %v1133_v17, %s2388_s21  ;;  %1144 = vrot.lane.b32.xlu0 %v1133_v17, %s2389_s26 }
 0x4fc   : > { %v1098_v25 = vpop.permute.xlu1 %1097 }
 0x4ff   : > { %1109 = vrot.lane.b32.xlu0 %v2735_v45, %s2386_s27  ;;  %1140 = vrot.lane.b32.xlu2 %v1131_v9, %s2389_s26  ;;  %s2395_s27 = smov 24  }
 0x53c   : > { %v1155_v20 = vpop.permute.xlu2 %1154 }
 0x551   : > { %v1157_v26 = vpop.permute.xlu2 %1156 }
 0x554   : > { %v1143_v22 = vpop.permute.xlu0 %1142 }
 0x555   : > { %v1165_v23 = vsel %vm1162_vm15, %v1143_v22, %v1155_v20 }
 0x556   : > { %v1173_v24 = vsel %vm2771_vm1, %v1165_v23, %v1132_v63 }
 0x557   : > { %1183 = vrot.lane.b32.xlu0 %v1173_v24, %s2390_s19 }
 0x559   : > { %v1141_v31 = vpop.permute.xlu2 %1140 }
 0x55c   : > { %v1153_v30 = vpop.permute.xlu1 %1152 }
 0x55d   : > { %v1164_v32 = vsel %vm1162_vm15, %v1141_v31, %v1153_v30 }
 0x55e   : > { %v1172_v36 = vsel %vm2771_vm1, %v1164_v32, %v1131_v9 }
 0x569   : > { %v1145_v27 = vpop.permute.xlu0 %1144 }
 0x56a   : > { %v1166_v28 = vsel %vm1162_vm15, %v1145_v27, %v1157_v26 }
 0x56b   : > { %v1174_v29 = vsel %vm2771_vm1, %v1166_v28, %v1133_v17 }
 0x56c   : > { %1197 = vrot.lane.b32.xlu0 %v1174_v29, %s2391_s29  ;;  %1185 = vrot.lane.b32.xlu1 %v1174_v29, %s2390_s19 }
 0x571   : > { %v1110_v33 = vpop.permute.xlu0 %1109 }
 0x572   : > { %v1122_v34 = vsel %vm1121_vm13, %v1098_v25, %v1110_v33 }
 0x573   : > { %v1130_v35 = vsel %vm2745_vm14, %v1122_v34, %v2735_v45 }
 0x574   : > { %1138 = vrot.lane.b32.xlu2 %v1130_v35, %s2389_s26  ;;  %1150 = vrot.lane.b32.xlu1 %v1130_v35, %s2388_s21  ;;  %s2150_s21 = sshll.u32 %s2513_s0, 3 }
 0x575   : > { %1181 = vrot.lane.b32.xlu0 %v1172_v36, %s2390_s19  ;;  %s1881_s6 = scalar_lea.hbm %s3026_s18, %s2150_s21 }
 0x57c   : > { %1195 = vrot.lane.b32.xlu2 %v1173_v24, %s2391_s29 }
 0x584   : > { %1193 = vrot.lane.b32.xlu2 %v1172_v36, %s2391_s29 }
 0x5c9   : > { %v1184_v41 = vpop.permute.xlu0 %1183 }
 0x5ce   : > { %v1139_v37 = vpop.permute.xlu2 %1138 }
 0x5d6   : > { %v1196_v42 = vpop.permute.xlu2 %1195 }
 0x5d7   : > { %v1206_v44 = vsel %vm1203_vm2, %v1184_v41, %v1196_v42 }
 0x5d8   : > { %v1214_v45 = vsel %vm2802_vm3, %v1206_v44, %v1173_v24 }
 0x5d9   : > { %v1285_v46 = vadd.f32 %v1284_v7, %v1214_v45 }
 0x5db   : > { %v1321_v47 = vsel %vm1316_vm4, -3.4028235e+38, %v1285_v46 }
 0x5dc   : > { %v1329_v48 = vsel %vm998_vm12, %v1321_v47, -inf }
 0x5dd   : > { %1330 = vmax.xlane.f32.xlu2 %v1329_v48 }
 0x5de   : > { %v1186_v49 = vpop.permute.xlu1 %1185  ;;  %v1198_v54 = vpop.permute.xlu0 %1197 }
 0x5df   : > { %v1194_v56 = vpop.permute.xlu2 %1193  ;;  %v1207_v57 = vsel %vm1203_vm2, %v1186_v49, %v1198_v54 }
 0x5e0   : > { %v1215_v59 = vsel %vm2802_vm3, %v1207_v57, %v1174_v29 }
 0x5e1   : > { %v1309_v62 = vadd.f32 %v2754_v2, %v1215_v59 }
 0x5e3   : > { %v1322_v3 = vsel %vm1316_vm4, -3.4028235e+38, %v1309_v62 }
 0x5e4   : > { %v1332_v6 = vsel %vm998_vm12, %v1322_v3, -inf }
 0x5e6   : > { %v1151_v50 = vpop.permute.xlu1 %1150 }
 0x5e7   : > { %v1163_v51 = vsel %vm1162_vm15, %v1139_v37, %v1151_v50  ;;  %v1182_v55 = vpop.permute.xlu0 %1181  ;;  %vm1601_vm15 = vcmask 1040384  }
 0x5e8   : > { %v1171_v53 = vsel %vm2771_vm1, %v1163_v51, %v1130_v35  ;;  %v1205_v58 = vsel %vm1203_vm2, %v1182_v55, %v1194_v56  ;;  %vm1611_vm1 = vcmask 1046528  }
 0x5e9   : > { %1191 = vrot.lane.b32.xlu0 %v1171_v53, %s2391_s29  ;;  %1179 = vrot.lane.b32.xlu1 %v1171_v53, %s2390_s19  ;;  %v1213_v61 = vsel %vm2802_vm3, %v1205_v58, %v1172_v36  ;;  %s2396_s29 = smov 96  }
 0x5ea   : > { %v1261_v63 = vadd.f32 %v2760_v10, %v1213_v61 }
 0x5ec   : > { %v1320_v5 = vsel %vm1316_vm4, -3.4028235e+38, %v1261_v63 }
 0x5ed   : > { %v1326_v7 = vsel %vm998_vm12, %v1320_v5, -inf }
 0x613   : > { %1333 = vmax.xlane.f32.xlu1 %v1332_v6  ;;  %1327 = vmax.xlane.f32.xlu0 %v1326_v7 }
 0x650   : > { %v1331_v9 = vpop.xlane.xlu2 %1330 }
 0x651   : > { %v1337_v11 = vsub.f32 %v1321_v47, %v1331_v9 }
 0x653   : > { %v1343_v0 = vmul.f32 1.442695, %v1337_v11 }
 0x655   : > { %2289 = vpow2.f32 %v1343_v0 }
 0x65b   : > { %v2290_v14 = vpop.eup %2289  ;;  %v1192_v15 = vpop.permute.xlu0 %1191 }
 0x65c   : > { %v1180_v16 = vpop.permute.xlu1 %1179  ;;  %v1353_v10 = vsel %vm998_vm12, %v2290_v14, 0.0 }
 0x65d   : > { %v1204_v2 = vsel %vm1203_vm2, %v1180_v16, %v1192_v15  ;;  %1354 = vadd.xlane.f32.xlu1 %v1353_v10  ;;  %v2265_v10 = vld [vmem:[%s3012_s4 + $0x1] ss:$0 sm:$0xff]  ;;  %vm1622_vm2 = vcmask 1045504  }
 0x65e   : > { %v1212_v17 = vsel %vm2802_vm3, %v1204_v2, %v1171_v53 }
 0x65f   : > { %v1237_v18 = vadd.f32 %v2740_v52, %v1212_v17 }
 0x661   : > { %v1319_v19 = vsel %vm1316_vm4, -3.4028235e+38, %v1237_v18 }
 0x662   : > { %v1323_v20 = vsel %vm998_vm12, %v1319_v19, -inf }
 0x663   : > { %1324 = vmax.xlane.f32.xlu2 %v1323_v20 }
 0x676   : > { %1414 = vrot.lane.b32.xlu1 %v2693_v60, %s2392_s24 }
 0x67e   : > { %1371 = vrot.lane.b32.xlu1 %v2698_v12, %s2392_s24 }
 0x686   : > { %v1334_v22 = vpop.xlane.xlu1 %1333  ;;  %v1328_v23 = vpop.xlane.xlu0 %1327 }
 0x687   : > { %v1338_v24 = vsub.f32 %v1322_v3, %v1334_v22  ;;  %v1336_v25 = vsub.f32 %v1320_v5, %v1328_v23  ;;  %v2176_v3 = vld [vmem:[%s3020_s12 + $0x8] sm:$0xff]  ;;  %v2175_v5 = vld [vmem:[%s3020_s12] sm:$0xff] }
 0x689   : > { %v1345_v26 = vmul.f32 1.442695, %v1338_v24  ;;  %v1341_v27 = vmul.f32 1.442695, %v1336_v25 }
 0x68b   : > { %2291 = vpow2.f32 %v1345_v26 }
 0x68c   : > { %2293 = vpow2.f32 %v1341_v27 }
 0x691   : > { %v2292_v28 = vpop.eup %2291 }
 0x692   : > { %v2294_v52 = vpop.eup %2293  ;;  %v1356_v29 = vsel %vm998_vm12, %v2292_v28, 0.0 }
 0x693   : > { %1357 = vadd.xlane.f32.xlu0 %v1356_v29  ;;  %v1350_v30 = vsel %vm998_vm12, %v2294_v52, 0.0 }
 0x694   : > { %1351 = vadd.xlane.f32.xlu2 %v1350_v30 }
 0x6a7   : > { %1435 = vrot.lane.b32.xlu0 %v2711_v21, %s2392_s24 }
 0x6ac   : > { %1393 = vrot.lane.b32.xlu2 %v2701_v13, %s2392_s24 }
 0x6d0   : > { %v1355_v32 = vpop.xlane.xlu1 %1354 }
 0x6d6   : > { %v1325_v60 = vpop.xlane.xlu2 %1324 }
 0x6d7   : > { %v1335_v12 = vsub.f32 %v1319_v19, %v1325_v60 }
 0x6d9   : > { %v1339_v31 = vmul.f32 1.442695, %v1335_v12 }
 0x6db   : > { %2295 = vpow2.f32 %v1339_v31 }
 0x6dc   : > { %2297 = vrcp.f32 %v1355_v32 }
 0x6e1   : > { %v2296_v33 = vpop.eup %2295 }
 0x6e2   : > { %v1347_v34 = vsel %vm998_vm12, %v2296_v33, 0.0  ;;  %v2298_v35 = vpop.eup %2297 }
 0x6e3   : > { %1348 = vadd.xlane.f32.xlu0 %v1347_v34  ;;  %v1365_v36 = vmul.f32 %v2298_v35, %v2290_v14 }
 0x6e5   : > { %v1369_v21 = vpack.c.bf16 %v1365_v36, %v1365_v36  ;;  %v2266_v36 = vld [vmem:[%s3051_s3 + $0x4] ss:$0 sm:$0xff] }
 0x6e8   : > { %v1415_v37 = vpop.permute.xlu1 %1414 }
 0x6e9   : > { %v1420_v38 = vsel %vm1376_vm5, %v1415_v37, 0 }
 0x6ea   : > { %1429 = vmatpush.bf16.msra.mxu2 %v1420_v38 }
 0x6ed   : > { %2077 = vmatmul.msk.bf16.vlgmr.msra.gmra.mxu2 %vm998_vm12, %v1369_v21  ;;  %v2267_v21 = vld [vmem:[%s3051_s3 + $0x5] ss:$0 sm:$0xff] }
 0x6f0   : > { %v1372_v13 = vpop.permute.xlu1 %1371 }
 0x6f1   : > { %v1378_v39 = vsel %vm1376_vm5, %v1372_v13, 0 }
 0x6f2   : > { %1387 = vmatpush.bf16.msrb.mxu1 %v1378_v39 }
 0x6f6   : > { %1501 = vmatpush.bf16.msra.mxu1 %v2176_v3 }
 0x6fa   : > { %1502 = vmatpush.bf16.msra.mxu1 %v2175_v5 }
 0x706   : > { %v1358_v41 = vpop.xlane.xlu0 %1357 }
 0x707   : > { %v1352_v40 = vpop.xlane.xlu2 %1351 }
 0x708   : > { %2299 = vrcp.f32 %v1352_v40 }
 0x709   : > { %2301 = vrcp.f32 %v1358_v41  ;;  %v2268_v41 = vld [vmem:[%s3013_s5 + $0x2] ss:$0 sm:$0xff] }
 0x70e   : > { %v2300_v42 = vpop.eup %2299 }
 0x70f   : > { %v1364_v43 = vmul.f32 %v2300_v42, %v2294_v52  ;;  %v1394_v44 = vpop.permute.xlu2 %1393  ;;  %v2302_v47 = vpop.eup %2301  ;;  %v2178_v52 = vld [vmem:[%s3021_s13 + $0x8] sm:$0xff] }
 0x710   : > { %v1399_v45 = vsel %vm1376_vm5, %v1394_v44, 0  ;;  %v1366_v48 = vmul.f32 %v2302_v47, %v2292_v28 }
 0x711   : > { %v1368_v46 = vpack.c.bf16 %v1364_v43, %v1364_v43  ;;  %1408 = vmatpush.bf16.msrb.mxu0 %v1399_v45 }
 0x712   : > { %v1370_v51 = vpack.c.bf16 %v1366_v48, %v1366_v48 }
 0x714   : > { %2076 = vmatmul.msk.bf16.vlgmr.msrb.gmra.mxu0 %vm998_vm12, %v1368_v46 }
 0x715   : > { %1566 = vmatpush.bf16.msra.mxu0 %v2178_v52 }
 0x719   : > { %v1436_v49 = vpop.permute.xlu0 %1435 }
 0x71a   : > { %v1441_v50 = vsel %vm1376_vm5, %v1436_v49, 0 }
 0x71b   : > { %1450 = vmatpush.bf16.msra.mxu3 %v1441_v50 }
 0x71e   : > { %2078 = vmatmul.msk.bf16.vlgmr.msra.gmra.mxu3 %vm998_vm12, %v1370_v51 }
 0x756   : > { %v1349_v53 = vpop.xlane.xlu0 %1348 }
 0x757   : > { %2303 = vrcp.f32 %v1349_v53 }
 0x75d   : > { %v2304_v54 = vpop.eup %2303 }
 0x75e   : > { %v1363_v55 = vmul.f32 %v2304_v54, %v2296_v33 }
 0x760   : > { %v1367_v56 = vpack.c.bf16 %v1363_v55, %v1363_v55 }
 0x762   : > { %2075 = vmatmul.msk.bf16.vlgmr.msrb.gmra.mxu1 %vm998_vm12, %v1367_v56 }
 0x770   : > { %v1431_v57 = vpop.f32.mrf.mxu2 }
 0x771   : > { %1461 = vrot.lane.b32.xlu1 %v1431_v57, %s2393_s23 }
 0x778   : > { %v1433_v58 = vpop.f32.mrf.mxu2 }
 0x791   : > { %v1410_v59 = vpop.f32.mrf.mxu0 }
 0x792   : > { %1457 = vrot.lane.b32.xlu2 %v1410_v59, %s2394_s25  ;;  %v2180_v59 = vld [vmem:[%s3023_s15 + $0x8] sm:$0xff]  ;;  %s1885_s25 = sshll.u32 %s1881_s6, 4  ;;  %s1886_s25 = int_to_ptr.hbm [resolvable:$true] %s1885_s25 }
 0x793   : > { %1666 = vmatpush.bf16.msrb.mxu2 %v2180_v59  ;;  %v2190_v59 = vld [vmem:[%s3025_s17 + $0x38] sm:$0xff]  ;;  %s2333_s19 = sshra.s32 %s1886_s25, 4  ;;  %s2334_s19 = int_to_ptr.hbm [resolvable:$true] %s2333_s19 }
 0x794   : > { %1825 = vmatpush.bf16.msrb.mxu1 %v2190_v59  ;;  %s2335_s21 = scalar_lea.hbm %s2334_s19, 8  ;;  %p2340_p0 = scmp.lt.s32.totalorder %s2334_s19, %s3026_s18 }
 0x795   : > { %p2336_p11 = scmp.ne.s32.totalorder %s2334_s19, %s2335_s21 }
 0x797   : > { %p2337_p12 = pnand %p2336_p11, %p2530_p5 }
 0x799   : > { %v1412_v61 = vpop.f32.mrf.mxu0  ;;  %p2338_p13 = pneg %p2337_p12 }
 0x79a   : > { %v2179_v61 = vld [vmem:[%s3023_s15] sm:$0xff] }
 0x79b   : > { %1667 = vmatpush.bf16.msrb.mxu2 %v2179_v61  ;;  %v2189_v61 = vld [vmem:[%s3025_s17 + $0x30] sm:$0xff] }
 0x79c   : > { %1826 = vmatpush.bf16.msrb.mxu1 %v2189_v61 }
 0x7a1   : > { %v1452_v62 = vpop.f32.mrf.mxu3 }
 0x7a2   : > { %1465 = vrot.lane.b32.xlu2 %v1452_v62, %s2395_s27  ;;  %v1597_v62 = vld [vmem:[%s3022_s14] sm:$0x7]  ;;  %s588_s27 = sand.u32 1, %s2373_s28  }
 0x7a3   : > { %v1606_v5 = vperm.slane %v1597_v62, 1  ;;  %s1970_s30 = sshll.u32 %s588_s27, 3  ;;  %s1871_s26 = scalar_lea.sflag [#allocation3], %s588_s27 }
 0x7a4   : > { %s590_s23 = scalar_lea.vmem [#allocation2], %s1970_s30  ;;  %s2339_s30 = scalar_lea.hbm %s3026_s18, 16 }
 0x7a5   : > { %s1883_s0 = sshll.u32 %s590_s23, 4  ;;  %p2341_p1 = scmp.lt.s32.totalorder %s2339_s30, %s2335_s21  ;;  %s1884_s0 = int_to_ptr.vmem [resolvable:$true] %s1883_s0 }
 0x7a7   : > { %p2342_p2 = por %p2341_p1, %p2340_p0 }
 0x7a9   : > { %v1454_v63 = vpop.f32.mrf.mxu3  ;;  %p2343_p3 = pnand %p2342_p2, %p2338_p13 }
 0x7df   : > { %v1389_v6 = vpop.f32.mrf.mxu1 }
 0x7e3   : > { %v1462_v0 = vpop.permute.xlu1 %1461 }
 0x7e7   : > { %v1391_v7 = vpop.f32.mrf.mxu1 }
 0x7ec   : > { %v1458_v9 = vpop.permute.xlu2 %1457 }
 0x7ed   : > { %v1468_v11 = vsel %vm998_vm12, %v1389_v6, %v1458_v9  ;;  %v1617_v6 = vperm.slane %v1597_v62, 2  ;;  %v1604_v9 = vperm.slane %v1597_v62, 0  ;;  %v2188_v62 = vld [vmem:[%s3025_s17 + $0x28] sm:$0xff] }
 0x7ee   : > { %v1470_v14 = vsel %vm1469_vm6, %v1468_v11, %v1462_v0  ;;  %1827 = vmatpush.bf16.msrb.mxu1 %v2188_v62 }
 0x7fc   : > { %v1466_v15 = vpop.permute.xlu2 %1465 }
 0x7fd   : > { %v1472_v16 = vsel %vm1471_vm7, %v1470_v14, %v1466_v15 }
 0x7fe   : > { %v1477_v2 = vpack.c.bf16 %v1472_v16, %v1472_v16 }
 0x800   : > { %2087 = vmatmul.msk.bf16.vlgmr.msra.gmra.mxu1 %vm608_vm0, %v1477_v2 }
 0x87d   : > { %v1504_v17 = vpop.f32.mrf.mxu1 }
 0x87e   : > { %v1505_v18 = vadd.f32 %v2265_v10, %v1504_v17 }
 0x880   : > { %v1508_v19 = vmul.f32 %v1505_v18, %v2612_v1 }
 0x882   : > { %v2864_v20 = vadd.f32 %v1508_v19, %v2616_v4  ;;  %v2177_v4 = vld [vmem:[%s3021_s13] sm:$0xff] }
 0x883   : > { %1567 = vmatpush.bf16.msra.mxu0 %v2177_v4  ;;  %v2271_v4 = vld [vmem:[%s3012_s4 + $0x4] ss:$0 sm:$0xff] }
 0x884   : > { %v1512_v22 = vsel %vm608_vm0, %v2864_v20, 0.0 }
 0x885   : > { %v1506_v23 = vpop.f32.mrf.mxu1  ;;  %1513 = vadd.xlane.f32.xlu1 %v1512_v22 }
 0x8f8   : > { %v1514_v24 = vpop.xlane.xlu1 %1513 }
 0x8f9   : > { %v1515_v25 = vmul.f32 %v1514_v24, %v2558_v8  ;;  %v2269_v24 = vld [vmem:[%s3012_s4 + $0x2] ss:$0 sm:$0xff] }
 0x8fb   : > { %v1516_v26 = vsub.f32 %v2864_v20, %v1515_v25 }
 0x8fd   : > { %v1517_v27 = vmul.f32 %v1516_v26, %v1516_v26 }
 0x8ff   : > { %v1518_v28 = vsel %vm608_vm0, %v1517_v27, 0.0  ;;  %v2270_v27 = vld [vmem:[%s3012_s4 + $0x3] ss:$0 sm:$0xff] }
 0x900   : > { %1519 = vadd.xlane.f32.xlu2 %v1518_v28 }
 0x973   : > { %v1520_v29 = vpop.xlane.xlu2 %1519 }
 0x974   : > { %v1521_v30 = vmul.f32 %v1520_v29, %v2558_v8 }
 0x976   : > { %v1522_v60 = vadd.f32 1e-05, %v1521_v30 }
 0x978   : > { %2305 = vrsqrt.f32 %v1522_v60  ;;  %vm1529_vm9 = vweird.f32 %v1522_v60 }
 0x97e   : > { %v2306_v12 = vpop.eup %2305 }
 0x97f   : > { %v1524_v31 = vmul.f32 %v2306_v12, %v1522_v60  ;;  %vm1530_vm8 = vweird.f32 %v2306_v12 }
 0x980   : > { %vm1531_vm10 = vmor %vm1529_vm9, %vm1530_vm8 }
 0x981   : > { %v1525_v32 = vmul.f32 %v2306_v12, %v1524_v31  ;;  %v2272_v31 = vld [vmem:[%s3012_s4 + $0x5] ss:$0 sm:$0xff] }
 0x983   : > { %v1526_v33 = vmul.f32 0.5, %v1525_v32 }
 0x985   : > { %v1527_v34 = vsub.f32 1.5, %v1526_v33 }
 0x987   : > { %v1528_v35 = vmul.f32 %v2306_v12, %v1527_v34 }
 0x989   : > { %v1532_v37 = vsel %vm1531_vm10, %v2306_v12, %v1528_v35 }
 0x98a   : > { %v1533_v38 = vmul.f32 %v1532_v37, %v1516_v26 }
 0x98c   : > { %v1535_v13 = vmul.f32 %v2266_v36, %v1533_v38 }
 0x98e   : > { %v1537_v39 = vadd.f32 %v2267_v21, %v1535_v13 }
 0x990   : > { %v1542_v40 = vpack.c.bf16 %v1537_v39, %v1537_v39 }
 0x992   : > { %2096 = vmatmul.msk.bf16.vlgmr.msra.gmra.mxu0 %vm608_vm0, %v1542_v40 }
 0xa0f   : > { %v1569_v42 = vpop.f32.mrf.mxu0 }
 0xa10   : > { %v1570_v43 = vadd.f32 %v2268_v41, %v1569_v42  ;;  %v2182_v41 = vld [vmem:[%s3024_s16 + $0x8] sm:$0xff] }
 0xa11   : > { %1731 = vmatpush.bf16.msrb.mxu3 %v2182_v41 }
 0xa12   : > { %v2097_v44 = vmul.f32 -1.442695, %v1570_v43 }
 0xa14   : > { %2307 = vpow2.f32 %v2097_v44 }
 0xa17   : > { %v1571_v45 = vpop.f32.mrf.mxu0 }
 0xa1a   : > { %v2308_v46 = vpop.eup %2307 }
 0xa1b   : > { %v1576_v47 = vadd.f32 1.0, %v2308_v46 }
 0xa1d   : > { %2309 = vrcp.f32 %v1576_v47  ;;  %v1588_v51 = vand.u32 2147483648, %v1576_v47  ;;  %v1586_v54 = vand.u32 2147483647, %v1576_v47  ;;  %vm1582_vm12 = vweird.f32 %v1576_v47 }
 0xa1f   : > { %v1589_v56 = vor.u32 1.1754944e-38, %v1588_v51  ;;  %vm1587_vm14 = vcmp.eq.f32.partialorder %v1586_v54, 8.507059e+37  ;;  %v2273_v51 = vld [vmem:[%s3051_s3 + $0x6] ss:$0 sm:$0xff] }
 0xa23   : > { %v2310_v48 = vpop.eup %2309 }
 0xa24   : > { %v1578_v49 = vmul.f32 %v2310_v48, %v1576_v47  ;;  %vm1583_vm11 = vweird.f32 %v2310_v48 }
 0xa25   : > { %vm1584_vm13 = vmor %vm1582_vm12, %vm1583_vm11 }
 0xa26   : > { %v1579_v50 = vsub.f32 1.0, %v1578_v49 }
 0xa28   : > { %v1580_v53 = vmul.f32 %v2310_v48, %v1579_v50 }
 0xa2a   : > { %v1581_v55 = vadd.f32 %v2310_v48, %v1580_v53 }
 0xa2c   : > { %v1585_v57 = vsel %vm1584_vm13, %v2310_v48, %v1581_v55  ;;  %v2274_v55 = vld [vmem:[%s3051_s3 + $0x7] ss:$0 sm:$0xff] }
 0xa2d   : > { %v1590_v58 = vsel %vm1587_vm14, %v1589_v56, %v1585_v57 }
 0xa2e   : > { %1593 = vrot.lane.b32.xlu0 %v1590_v58, %s2396_s29 }
 0xaa0   : > { %v1594_v63 = vpop.permute.xlu0 %1593 }
 0xaa1   : > { %v1596_v3 = vmul.f32 %v1594_v63, %v1570_v43  ;;  %v2187_v63 = vld [vmem:[%s3025_s17 + $0x20] sm:$0xff] }
 0xaa2   : > { %1828 = vmatpush.bf16.msrb.mxu1 %v2187_v63 }
 0xaa3   : > { %v1599_v7 = vrot.slane %v1596_v3, 7  ;;  %v2186_v3 = vld [vmem:[%s3025_s17 + $0x18] sm:$0xff] }
 0xaa5   : > { %v1602_v11 = vsel %vm1601_vm15, 0.0, %v1599_v7  ;;  %v1603_v0 = vsel %vm1601_vm15, %v1599_v7, 0.0  ;;  %v2275_v7 = vld [vmem:[%s3013_s5 + $0x1] ss:$0 sm:$0xff] }
 0xaa6   : > { %v1607_v14 = vmul.f32 %v1606_v5, %v1602_v11  ;;  %v1608_v15 = vmul.f32 %v1606_v5, %v1603_v0  ;;  %v1618_v16 = vmul.f32 %v1617_v6, %v1602_v11  ;;  %v1619_v2 = vmul.f32 %v1617_v6, %v1603_v0  ;;  %1829 = vmatpush.bf16.msrb.mxu1 %v2186_v3  ;;  %v2185_v5 = vld [vmem:[%s3025_s17 + $0x10] sm:$0xff]  ;;  %v2184_v6 = vld [vmem:[%s3025_s17 + $0x8] sm:$0xff] }
 0xaa7   : > { %v1605_v19 = vmul.f32 %v1604_v9, %v1602_v11  ;;  %v2183_v9 = vld [vmem:[%s3025_s17] sm:$0xff] }
 0xaa8   : > { %v1612_v10 = vrot.slane %v1607_v14, 1  ;;  %v1613_v17 = vrot.slane %v1608_v15, 1  ;;  %v1623_v18 = vrot.slane %v1618_v16, 2  ;;  %v1624_v22 = vrot.slane %v1619_v2, 2 }
 0xaaa   : > { %v1614_v23 = vsel %vm1611_vm1, %v1612_v10, %v1613_v17  ;;  %v1625_v26 = vsel %vm1622_vm2, %v1623_v18, %v1624_v22  ;;  %1830 = vmatpush.bf16.msrb.mxu1 %v2185_v5 }
 0xaab   : > { %v1616_v25 = vadd.f32 %v1614_v23, %v1605_v19 }
 0xaad   : > { %v1627_v28 = vadd.f32 %v1625_v26, %v1616_v25 }
 0xaae   : > { %1831 = vmatpush.bf16.msrb.mxu1 %v2184_v6 }
 0xaaf   : > { %v1630_v52 = vadd.f32 %v2269_v24, %v1627_v28 }
 0xab1   : > { %v1633_v29 = vmul.f32 %v2270_v27, %v1630_v52 }
 0xab2   : > { %1832 = vmatpush.bf16.msrb.mxu1 %v2183_v9 }
 0xab3   : > { %v1636_v30 = vadd.f32 %v2271_v4, %v1633_v29  ;;  %v2276_v4 = vld [vmem:[%s3012_s4 + $0x6] ss:$0 sm:$0xff] }
 0xab5   : > { %v1637_v60 = vmax.f32 %v1636_v30, 0.0 }
 0xab7   : > { %v1642_v12 = vpack.c.bf16 %v1637_v60, %v1637_v60 }
 0xab9   : > { %2106 = vmatmul.msk.bf16.vlgmr.msrb.gmra.mxu2 %vm608_vm0, %v1642_v12 }
 0xb3c   : > { %v1669_v32 = vpop.f32.mrf.mxu2 }
 0xb3d   : > { %v1670_v33 = vadd.f32 %v2272_v31, %v1669_v32 }
 0xb3f   : > { %v1673_v34 = vmul.f32 %v1670_v33, %v2612_v1 }
 0xb41   : > { %v2912_v35 = vadd.f32 %v1673_v34, %v2864_v20  ;;  %v2181_v20 = vld [vmem:[%s3024_s16] sm:$0xff] }
 0xb42   : > { %1732 = vmatpush.bf16.msrb.mxu3 %v2181_v20 }
 0xb43   : > { %v1677_v36 = vsel %vm608_vm0, %v2912_v35, 0.0 }
 0xb44   : > { %v1671_v37 = vpop.f32.mrf.mxu2  ;;  %1678 = vadd.xlane.f32.xlu0 %v1677_v36 }
 0xbb7   : > { %v1679_v38 = vpop.xlane.xlu0 %1678 }
 0xbb8   : > { %v1680_v21 = vmul.f32 %v1679_v38, %v2558_v8 }
 0xbba   : > { %v1681_v13 = vsub.f32 %v2912_v35, %v1680_v21 }
 0xbbc   : > { %v1682_v39 = vmul.f32 %v1681_v13, %v1681_v13 }
 0xbbe   : > { %v1683_v40 = vsel %vm608_vm0, %v1682_v39, 0.0 }
 0xbbf   : > { %1684 = vadd.xlane.f32.xlu1 %v1683_v40 }
 0xc32   : > { %v1685_v42 = vpop.xlane.xlu1 %1684 }
 0xc33   : > { %v1686_v43 = vmul.f32 %v1685_v42, %v2558_v8 }
 0xc35   : > { %v1687_v44 = vadd.f32 1e-05, %v1686_v43 }
 0xc37   : > { %2311 = vrsqrt.f32 %v1687_v44  ;;  %vm1694_vm4 = vweird.f32 %v1687_v44 }
 0xc3d   : > { %v2312_v45 = vpop.eup %2311 }
 0xc3e   : > { %v1689_v46 = vmul.f32 %v2312_v45, %v1687_v44  ;;  %vm1695_vm3 = vweird.f32 %v2312_v45  ;;  %v2277_v44 = vld [vmem:[%s3051_s3 + $0x8] ss:$0 sm:$0xff] }
 0xc3f   : > { %vm1696_vm5 = vmor %vm1694_vm4, %vm1695_vm3 }
 0xc40   : > { %v1690_v47 = vmul.f32 %v2312_v45, %v1689_v46  ;;  %v2278_v46 = vld [vmem:[%s3051_s3 + $0x9] ss:$0 sm:$0xff] }
 0xc42   : > { %v1691_v48 = vmul.f32 0.5, %v1690_v47 }
 0xc44   : > { %v1692_v49 = vsub.f32 1.5, %v1691_v48 }
 0xc46   : > { %v1693_v50 = vmul.f32 %v2312_v45, %v1692_v49 }
 0xc48   : > { %v1697_v53 = vsel %vm1696_vm5, %v2312_v45, %v1693_v50 }
 0xc49   : > { %v1698_v54 = vmul.f32 %v1697_v53, %v1681_v13 }
 0xc4b   : > { %v1700_v56 = vmul.f32 %v2273_v51, %v1698_v54 }
 0xc4d   : > { %v1702_v57 = vadd.f32 %v2274_v55, %v1700_v56 }
 0xc4f   : > { %v1707_v58 = vpack.c.bf16 %v1702_v57, %v1702_v57 }
 0xc51   : > { %2115 = vmatmul.msk.bf16.vlgmr.msrb.gmra.mxu3 %vm608_vm0, %v1707_v58 }
 0xcd4   : > { %v1734_v11 = vpop.f32.mrf.mxu3 }
 0xcd5   : > { %v1735_v0 = vadd.f32 %v2275_v7, %v1734_v11 }
 0xcd7   : > { %v2116_v14 = vmul.f32 -1.442695, %v1735_v0 }
 0xcd9   : > { %2313 = vpow2.f32 %v2116_v14 }
 0xcdc   : > { %v1736_v15 = vpop.f32.mrf.mxu3 }
 0xcdf   : > { %v2314_v16 = vpop.eup %2313 }
 0xce0   : > { %v1741_v2 = vadd.f32 1.0, %v2314_v16 }
 0xce2   : > { %2315 = vrcp.f32 %v1741_v2  ;;  %v1753_v19 = vand.u32 2147483648, %v1741_v2  ;;  %v1751_v23 = vand.u32 2147483647, %v1741_v2  ;;  %vm1747_vm7 = vweird.f32 %v1741_v2 }
 0xce4   : > { %v1754_v25 = vor.u32 1.1754944e-38, %v1753_v19  ;;  %vm1752_vm9 = vcmp.eq.f32.partialorder %v1751_v23, 8.507059e+37 }
 0xce8   : > { %v2316_v10 = vpop.eup %2315 }
 0xce9   : > { %v1743_v17 = vmul.f32 %v2316_v10, %v1741_v2  ;;  %vm1748_vm6 = vweird.f32 %v2316_v10 }
 0xcea   : > { %vm1749_vm8 = vmor %vm1747_vm7, %vm1748_vm6 }
 0xceb   : > { %v1744_v18 = vsub.f32 1.0, %v1743_v17 }
 0xced   : > { %v1745_v22 = vmul.f32 %v2316_v10, %v1744_v18 }
 0xcef   : > { %v1746_v24 = vadd.f32 %v2316_v10, %v1745_v22 }
 0xcf1   : > { %v1750_v26 = vsel %vm1749_vm8, %v2316_v10, %v1746_v24 }
 0xcf2   : > { %v1755_v27 = vsel %vm1752_vm9, %v1754_v25, %v1750_v26 }
 0xcf3   : > { %v1757_v28 = vmul.f32 %v1755_v27, %v1735_v0 }
 0xcf5   : > { %v1774_v52 = vpack.c.bf16 %v1757_v28, %v1757_v28 }
 0xcf7   : > { %1833 = vmatmul.bf16.vlgmr.msrb.gmra.mxu1 %v1774_v52 }
 0xd74   : > { %v1834_v29 = vpop.f32.mrf.mxu1 }
 0xd75   : > { %v1835_v30 = vadd.f32 %v2276_v4, %v1834_v29 }
 0xd77   : > { %v1838_v60 = vmul.f32 0.5, %v1835_v30 }
 0xd79   : > { %v1839_v12 = vmul.f32 %v1838_v60, %v2612_v1 }
 0xd7b   : > { %v1840_v31 = vadd.f32 %v1839_v12, %v2912_v35 }
 0xd7c   : > { %v1836_v32 = vpop.f32.mrf.mxu1 }
 0xd7d   : > { %v1843_v33 = vsel %vm608_vm0, %v1840_v31, 0.0 }
 0xd7e   : > { %1844 = vadd.xlane.f32.xlu2 %v1843_v33 }
 0xdf1   : > { %v1845_v34 = vpop.xlane.xlu2 %1844 }
 0xdf2   : > { %v1846_v36 = vmul.f32 %v1845_v34, %v2558_v8 }
 0xdf4   : > { %v1847_v37 = vsub.f32 %v1840_v31, %v1846_v36 }
 0xdf6   : > { %v1848_v38 = vmul.f32 %v1847_v37, %v1847_v37 }
 0xdf8   : > { %v1849_v21 = vsel %vm608_vm0, %v1848_v38, 0.0 }
 0xdf9   : > { %1850 = vadd.xlane.f32.xlu1 %v1849_v21 }
 0xe6c   : > { %v1851_v13 = vpop.xlane.xlu1 %1850 }
 0xe6d   : > { %v1852_v39 = vmul.f32 %v1851_v13, %v2558_v8 }
 0xe6f   : > { %v1853_v1 = vadd.f32 1e-05, %v1852_v39 }
 0xe71   : > { %2317 = vrsqrt.f32 %v1853_v1  ;;  %vm1860_vm11 = vweird.f32 %v1853_v1 }
 0xe77   : > { %v2318_v35 = vpop.eup %2317 }
 0xe78   : > { %v1855_v40 = vmul.f32 %v2318_v35, %v1853_v1  ;;  %vm1861_vm10 = vweird.f32 %v2318_v35 }
 0xe79   : > { %vm1862_vm12 = vmor %vm1860_vm11, %vm1861_vm10 }
 0xe7a   : > { %v1856_v41 = vmul.f32 %v2318_v35, %v1855_v40 }
 0xe7c   : > { %v1857_v20 = vmul.f32 0.5, %v1856_v41 }
 0xe7e   : > { %v1858_v42 = vsub.f32 1.5, %v1857_v20 }
 0xe80   : > { %v1859_v43 = vmul.f32 %v2318_v35, %v1858_v42 }
 0xe82   : > { %v1863_v8 = vsel %vm1862_vm12, %v2318_v35, %v1859_v43 }
 0xe83   : > { %v1864_v45 = vmul.f32 %v1863_v8, %v1847_v37 }
 0xe85   : > { %v1866_v47 = vmul.f32 %v2277_v44, %v1864_v45 }
 0xe87   : > { %v1868_v48 = vadd.f32 %v2278_v46, %v1866_v47 }
 0xe89   : > { %1869 = vst.msk [vmem:[%s590_s23] sm:$0xff] %vm608_vm0, %v1868_v48 }
 0xe8a   : > { %2346 = shalt.err (!%p2343_p3)
}
 0xe8b   : > { %2191 = dma.vmem_to_hbm [thread:$0]  (%p2530_p5), %s1884_s0, 128, %s1886_s25, %s1871_s26  }
 0xe8c PF: > { %s3061_s27 = sld [smem:[#allocation7_spill]] }
 0xe8d   : > { %s3062_s24 = sld [smem:[#allocation5_spill]] }
 0xe92   : > { %p2197_p4 = scmp.ge.s32.totalorder %s3061_s27, 2 }
 0xe93   : > { %s1897_s3 = sand.u32 1, %s3062_s24  }
 0xe94   : > { %p2194_p7 = pnand %p2197_p4, %p2534_p6  ;;  %s1898_s29 = scalar_lea.sflag [#allocation3], %s1897_s3 }
 0xe96   : > { %p2195_p8 = pneg %p2194_p7 }
 0xe98   : > { %2364 = dma.done.wait (%p2195_p8), %s1898_s29, 128  }
 0xe99   : > { %2366 = vsyncadd (%p2195_p8), %s1898_s29, 4294967168  ;;  %s3064_s30 = sld [smem:[#allocation8_spill]]  ;;  %s3067_s27 = smov %s2373_s28 }
 0xe9a   : > { %s3065_s19 = sld [smem:[#allocation6_spill]] }
 0xe9b   : > { %s3066_s29 = sld [smem:[#allocation9_spill]] }
 0xe9f   : > { %p28_p9 = scmp.ge.s32.totalorder %s3064_s30, 4  }
 0xea0   : > { %s3068_s28 = smov %s3065_s19 }
 0xea1   :  { %30 = sbr.rel (!%p28_p9) target bundleno = 9 (0x9), region = 133 }
 0xea6   :  { %1904 = vsyncpa [#allocation3], 1 }
 0xea7   :  { %1906 = vsyncpa [#allocation3 + $0x1], 1 }

</bundles_post_ra>
